<compile_context>
chip_gen: v6e
topology: v6e:2x2x1
jax: 0.10.0
libtpu: 0.0.40
codegen_flags: <defaults>
</compile_context>

<pallas_src>
import functools

import jax
import jax.numpy as jnp
from jax.experimental import pallas as pl
from jax.experimental.pallas import tpu as pltpu

VAR_NFEATS = 19
LN_EPS = 1e-5  # torch.nn.LayerNorm default


def _round_up(x, m):
    return ((x + m - 1) // m) * m


# ----------------------------------------------------------------------------
# Fused LayerNorm(F) + Linear(F, 1, bias=False):
#   out = rsqrt(var + eps) * sum_f(wgp_f * x_f) + c0
# with wgp = w*gamma - sum(w*gamma)/F  and  c0 = sum(w*beta) folded on host.
# ----------------------------------------------------------------------------

@functools.partial(jax.jit, static_argnames=("tile_m",))
def _mlp1_forward(variable_features, ln_gamma, ln_beta, lin_weight, tile_m):
    n, f = variable_features.shape

    # Tile rows: multiple of 128 (lane-dense (1, tm) output stores), large
    # enough to amortize the ~0.35us/step overhead, and small enough that the
    # grid has >= 2 steps when n allows it (both v7x TensorCores get work).
    tm = min(int(tile_m), _round_up(pl.cdiv(n, 2), 128))
    tm = max(128, (tm // 128) * 128)
    if tm >= 512:
        tm = (tm // 512) * 512          # keep the in-kernel 512-row chunking exact
    chunk = 512 if tm % 512 == 0 else tm
    num_chunks = tm // chunk
    num_tiles = pl.cdiv(n, tm)

    # Fold LayerNorm affine + Linear weight into one tiny parameter row:
    #   params = [wgp_0 ... wgp_{F-1}, c0]
    w = lin_weight.reshape(-1).astype(jnp.float32)
    g = ln_gamma.reshape(-1).astype(jnp.float32)
    b = ln_beta.reshape(-1).astype(jnp.float32)
    wg = w * g
    wgp = wg - jnp.sum(wg) / f
    c0 = jnp.sum(w * b).reshape(1)
    params = jnp.concatenate([wgp, c0]).reshape(1, f + 1)

    inv_f = 1.0 / f

    def kernel(params_ref, x_ref, o_ref):
        # params_ref: (1, F+1) VMEM   x_ref: (TM, F) VMEM   o_ref: (1, TM) VMEM
        p = params_ref[...].astype(jnp.float32)
        wgp_row = p[:, :f]                      # (1, F)
        c0_val = p[:, f:]                       # (1, 1)
        # Static 512-row sub-chunks: temporaries stay small, no block-wide
        # transpose of the input, reductions in native row-major layout.
        for j in range(num_chunks):
            r0, r1 = j * chunk, (j + 1) * chunk
            xs = x_ref[r0:r1, :].astype(jnp.float32)                 # (chunk, F)
            mean = jnp.sum(xs, axis=-1, keepdims=True) * inv_f       # (chunk, 1)
            t = jnp.sum(xs * wgp_row, axis=-1, keepdims=True)        # (chunk, 1)
            var = jnp.sum(xs * xs, axis=-1, keepdims=True) * inv_f - mean * mean
            var = jnp.maximum(var, 0.0)   # cancellation guard; keeps rsqrt finite
            col = jax.lax.rsqrt(var + LN_EPS) * t + c0_val           # (chunk, 1)
            # Only the (chunk, 1) result is relayout'ed to lane-dense layout.
            o_ref[:, r0:r1] = jnp.transpose(col).astype(o_ref.dtype)

    out = pl.pallas_call(
        kernel,
        out_shape=jax.ShapeDtypeStruct((1, n), variable_features.dtype),
        grid_spec=pltpu.PrefetchScalarGridSpec(
            num_scalar_prefetch=0,
            grid=(num_tiles,),
            in_specs=[
                pl.BlockSpec((1, f + 1), lambda i: (0, 0)),   # folded params
                pl.BlockSpec((tm, f), lambda i: (i, 0)),      # variable_features tile
            ],
            # Lane-dense (1, tm) blocks written straight into the (1, n) output;
            # Pallas masks the tail writeback -> no pad / no [:n] copy pass.
            out_specs=pl.BlockSpec((1, tm), lambda i: (0, i)),
        ),
        compiler_params=pltpu.CompilerParams(
            dimension_semantics=("parallel",),
            vmem_limit_bytes=48 * 1024 * 1024,
        ),
    )(params, variable_features)

    return out.reshape(n)   # free metadata reshape


def mlp1_policy_forward(constraint_features, edge_indices, edge_features,
                        variable_features, ln_gamma, ln_beta, lin_weight,
                        tile_m=8192):
    # constraint_features / edge_indices / edge_features are unused, exactly
    # as in the reference PyTorch forward().
    del constraint_features, edge_indices, edge_features
    return _mlp1_forward(variable_features, ln_gamma, ln_beta, lin_weight,
                         tile_m=tile_m)


# ----------------------------------------------------------------------------
# Reference + self-check
# ----------------------------------------------------------------------------

def _reference(variable_features, ln_gamma, ln_beta, lin_weight):
    x = variable_features.astype(jnp.float32)
    mean = jnp.mean(x, axis=-1, keepdims=True)
    var = jnp.mean((x - mean) ** 2, axis=-1, keepdims=True)
    xhat = (x - mean) / jnp.sqrt(var + LN_EPS)
    y = xhat * ln_gamma + ln_beta
    return (y @ lin_weight.reshape(-1, 1))[:, 0]


if __name__ == "__main__":
    key = jax.random.PRNGKey(0)
    k1, k2, k3, k4, k5, k6, k7 = jax.random.split(key, 7)

    # Small, module-consistent shapes.  n_vars=300 is not a multiple of the
    # tile, so both the partial-tail masking and the >=2-grid-step (megacore)
    # paths are exercised.
    n_cons, n_vars, n_edges = 12, 300, 40
    constraint_features = jax.random.normal(k1, (n_cons, 5), dtype=jnp.float32)
    edge_indices = jax.random.randint(k2, (2, n_edges), 0, n_cons)
    edge_features = jax.random.normal(k3, (n_edges, 1), dtype=jnp.float32)
    variable_features = jax.random.normal(k4, (n_vars, VAR_NFEATS),
                                          dtype=jnp.float32)

    # Deterministic synthetic parameters (shapes from the module __init__).
    ln_gamma = 1.0 + 0.1 * jax.random.normal(k5, (VAR_NFEATS,), dtype=jnp.float32)
    ln_beta = 0.05 * jax.random.normal(k6, (VAR_NFEATS,), dtype=jnp.float32)
    lin_weight = 0.2 * jax.random.normal(k7, (1, VAR_NFEATS), dtype=jnp.float32)

    out = mlp1_policy_forward(constraint_features, edge_indices, edge_features,
                              variable_features, ln_gamma, ln_beta, lin_weight)
    out = jax.block_until_ready(out)

    ref = _reference(variable_features, ln_gamma, ln_beta, lin_weight)
    assert out.shape == (n_vars,)
    assert jnp.allclose(out, ref, atol=1e-4, rtol=1e-4), "mismatch vs reference"
    print("KERNEL_OK")
</pallas_src>

<mosaic_0001>
module attributes {stable_mosaic.version = 11 : i64} {
  func.func @kernel(%arg0: i32, %arg1: memref<1x20xf32, #tpu.memory_space<vmem>>, %arg2: memref<256x19xf32, #tpu.memory_space<vmem>>, %arg3: memref<1x256xf32, #tpu.memory_space<vmem>>) attributes {dimension_semantics = [#tpu.dimension_semantics<parallel>], iteration_bounds = array<i64: 2>, scalar_prefetch = 0 : i64, scratch_operands = 0 : i64, tpu.core_type = #tpu.core_type<tc>, window_params = [{pipeline_mode = #tpu.pipeline_mode<synchronous>, transform_indices = @transform_0, window_bounds = array<i64: 1, 20>}, {transform_indices = @transform_1, window_bounds = array<i64: 256, 19>}, {transform_indices = @transform_2, window_bounds = array<i64: 1, 256>}]} {
    %c0 = arith.constant 0 : index
    %c0_0 = arith.constant 0 : index
    %0 = vector.load %arg1[%c0, %c0_0] : memref<1x20xf32, #tpu.memory_space<vmem>>, vector<1x20xf32>
    %1 = vector.extract_strided_slice %0 {offsets = [0, 0], sizes = [1, 19], strides = [1, 1]} : vector<1x20xf32> to vector<1x19xf32>
    %2 = vector.extract_strided_slice %0 {offsets = [0, 19], sizes = [1, 1], strides = [1, 1]} : vector<1x20xf32> to vector<1x1xf32>
    %c0_1 = arith.constant 0 : index
    %c0_2 = arith.constant 0 : index
    %3 = vector.load %arg2[%c0_1, %c0_2] : memref<256x19xf32, #tpu.memory_space<vmem>>, vector<256x19xf32>
    %cst = arith.constant dense<0.000000e+00> : vector<256xf32>
    %4 = vector.multi_reduction <add>, %3, %cst [1] : vector<256x19xf32> to vector<256xf32>
    %5 = vector.shape_cast %4 : vector<256xf32> to vector<256x1xf32>
    %cst_3 = arith.constant 0.0526315793 : f32
    %6 = vector.broadcast %cst_3 : f32 to vector<256x1xf32>
    %7 = arith.mulf %5, %6 : vector<256x1xf32>
    %8 = vector.broadcast %1 : vector<1x19xf32> to vector<256x19xf32>
    %9 = arith.mulf %3, %8 : vector<256x19xf32>
    %cst_4 = arith.constant dense<0.000000e+00> : vector<256xf32>
    %10 = vector.multi_reduction <add>, %9, %cst_4 [1] : vector<256x19xf32> to vector<256xf32>
    %11 = vector.shape_cast %10 : vector<256xf32> to vector<256x1xf32>
    %12 = arith.mulf %3, %3 : vector<256x19xf32>
    %cst_5 = arith.constant dense<0.000000e+00> : vector<256xf32>
    %13 = vector.multi_reduction <add>, %12, %cst_5 [1] : vector<256x19xf32> to vector<256xf32>
    %14 = vector.shape_cast %13 : vector<256xf32> to vector<256x1xf32>
    %cst_6 = arith.constant 0.0526315793 : f32
    %15 = vector.broadcast %cst_6 : f32 to vector<256x1xf32>
    %16 = arith.mulf %14, %15 : vector<256x1xf32>
    %17 = arith.mulf %7, %7 : vector<256x1xf32>
    %18 = arith.subf %16, %17 : vector<256x1xf32>
    %cst_7 = arith.constant 0.000000e+00 : f32
    %19 = vector.broadcast %cst_7 : f32 to vector<256x1xf32>
    %20 = arith.maximumf %18, %19 : vector<256x1xf32>
    %cst_8 = arith.constant 9.99999974E-6 : f32
    %21 = vector.broadcast %cst_8 : f32 to vector<256x1xf32>
    %22 = arith.addf %20, %21 : vector<256x1xf32>
    %23 = math.rsqrt %22 : vector<256x1xf32>
    %24 = arith.mulf %23, %11 : vector<256x1xf32>
    %25 = vector.broadcast %2 : vector<1x1xf32> to vector<256x1xf32>
    %26 = arith.addf %24, %25 : vector<256x1xf32>
    %27 = tpu.transpose %26, [1, 0] : vector<256x1xf32> -> vector<1x256xf32>
    %c0_9 = arith.constant 0 : index
    %c0_10 = arith.constant 0 : index
    %28 = vector.load %arg3[%c0_9, %c0_10] : memref<1x256xf32, #tpu.memory_space<vmem>>, vector<1x256xf32>
    tpu.vector_store %arg3[%c0_9, %c0_10], %27 {strides = array<i32>} : memref<1x256xf32, #tpu.memory_space<vmem>>, vector<1x256xf32>,
    return
  }
  func.func @transform_0(%arg0: i32) -> (i32, i32) {
    %c0_i32 = arith.constant 0 : i32
    %c0_i32_0 = arith.constant 0 : i32
    %c0_i32_1 = arith.constant 0 : i32
    return %c0_i32, %c0_i32_0 : i32, i32
  }
  func.func @transform_1(%arg0: i32) -> (i32, i32) {
    %c0_i32 = arith.constant 0 : i32
    %c0_i32_0 = arith.constant 0 : i32
    return %arg0, %c0_i32 : i32, i32
  }
  func.func @transform_2(%arg0: i32) -> (i32, i32) {
    %c0_i32 = arith.constant 0 : i32
    %c0_i32_0 = arith.constant 0 : i32
    return %c0_i32, %arg0 : i32, i32
  }
}

</mosaic_0001>

<bundles_post_ra>
// kernel: _mlp1_forward.1
= control target key start
LH: loop header
LB: loop body
LE: loop exit
PB: predicated region body
PF: predicated region fallthrough
CT: control target
= control target key end

     0   :  { %s2042_s9 = smov 0   ;;  %s2044_s10 = smov 0   ;;  %s3154_s0 = inlined_call_operand.vmem [shape: f32[1,20], index: 0, kind: input, shape index: {}]   ;;  %s3155_s1 = inlined_call_operand.vmem [shape: f32[300,19], index: 1, kind: input, shape index: {}]   ;;  %s3156_s2 = inlined_call_operand.vmem [shape: f32[1,300], index: 2, kind: output, shape index: {}]  }
   0x1   :  { %s2046_s11 = smov 0  }
   0x2 LB: > { %s2055_s12 = sadd.s32 4294967295, %s1957_s11   ;;  %s2057_s13 = sadd.s32 1, %s1957_s11   ;;  %s1957_s11 = sphi %s2046_s11, %s3202_s11   ;;  %s1953_s10 = sphi %s2044_s10, %s3201_s10   ;;  %s1949_s9 = sphi %s2042_s9, %s3200_s9  }
   0x3   : > { %s63_s14 = ssub.s32 %s1957_s11, %s2057_s13  ;;  %s66_s15 = sadd.s32 1, %s1953_s10 }
   0x4   : > { %p64_p0 = scmp.eq.s32.totalorder %s63_s14, 0  ;;  %p76_p1 = scmp.ne.s32.totalorder %s1953_s10, %s1949_s9 }
   0x5   : > { %p77_p2 = scmp.eq.s32.totalorder %s2055_s12, 1  ;;  %p1612_p3 = scmp.ge.s32.totalorder %s1957_s11, 1 }
   0x6   : > { %s2065_s16 = scalar_select %p64_p0, %s1953_s10, %s66_s15  }
   0x7   : > { %p2067_p4 = por %p77_p2, %p76_p1  ;;  %p121_p5 = scmp.lt.s32.totalorder %s1957_s11, 3 }
   0x9   : > { %p122_p6 = pnand %p1612_p3, %p121_p5 }
   0xb   : > { %125 = sbr.rel (%p122_p6) target bundleno = 725 (0x2d5), region = 28 }
  0x10   : > { %s1614_s18 = sshll.u32 %s2055_s12, 5  ;;  %vm198_vm0 = vcmask 154624   ;;  %v2236_v62 = vld [vmem:[%s3154_s0] ss:$0 sm:$0xff]  ;;  %s2023_s25 = smov 109  }
  0x11   : > { %p151_p7 = scmp.lt.s32.totalorder %s1614_s18, 37  ;;  %s143_s28 = sand.u32 1, %s1949_s9  }
  0x12   : > { %s1613_s29 = sshll.u32 %s143_s28, 1  ;;  %s1618_s3 = sshll.u32 (%p2067_p4), %s2055_s12, 1 }
  0x13   : > { %s3204_s18 = smov (!%p151_p7, %s1614_s18), 37  ;;  %s2729_s30 = scalar_lea.vmem [#allocation2], %s1613_s29  }
  0x14   : > { %s1615_s19 = sshll.u32 %s3204_s18, 3  ;;  %s1068_s4 = ssub.s32 (%p2067_p4), 3, %s1618_s3 }
  0x15   : > { %s2075_s22 = scalar_lea.vmem %s3155_s1, %s1615_s19  ;;  %s2738_s7 = scalar_lea.vmem (%p2067_p4), %s3156_s2, %s1618_s3  }
  0x16   : > { %v2078_v0 = vld [vmem:[%s2075_s22 + $0x10] sm:$0xff]  ;;  %v2081_v1 = vld [vmem:[%s2075_s22] sm:$0xff]  ;;  %v2084_v2 = vld [vmem:[%s2075_s22 + $0x18] sm:$0xff]  ;;  %p1069_p8 = scmp.lt.s32.totalorder (%p2067_p4), %s1068_s4, 2 }
  0x17   : > { %v205_v3 = vsel %vm198_vm0, %v2078_v0, 0.0  ;;  %v199_v4 = vsel %vm198_vm0, %v2081_v1, 0.0  ;;  %v2091_v5 = vld [vmem:[%s2075_s22 + $0x8] sm:$0xff]  ;;  %v208_v6 = vsel %vm198_vm0, %v2084_v2, 0.0  ;;  %v2101_v9 = vld [vmem:[%s2075_s22 + $0x20] sm:$0xff]  ;;  %v2108_v12 = vld [vmem:[%s2075_s22 + $0x38] sm:$0xff] }
  0x18   : > { %206 = vadd.xlane.f32.xlu1 %v205_v3  ;;  %200 = vadd.xlane.f32.xlu0 %v199_v4  ;;  %v202_v7 = vsel %vm198_vm0, %v2091_v5, 0.0  ;;  %v2098_v8 = vld [vmem:[%s2075_s22 + $0x28] sm:$0xff]  ;;  %v211_v11 = vsel %vm198_vm0, %v2101_v9, 0.0  ;;  %v2111_v13 = vld [vmem:[%s2075_s22 + $0x30] sm:$0xff]  ;;  %v220_v14 = vsel %vm198_vm0, %v2108_v12, 0.0  ;;  %v2121_v17 = vld [vmem:[%s2075_s22 + $0x40] sm:$0xff]  ;;  %v334_v4 = vmul.f32 %v2236_v62, %v2091_v5 }
  0x19   : > { %v214_v10 = vsel %vm198_vm0, %v2098_v8, 0.0  ;;  %v217_v15 = vsel %vm198_vm0, %v2111_v13, 0.0  ;;  %v2118_v16 = vld [vmem:[%s2075_s22 + $0x48] sm:$0xff]  ;;  %v223_v19 = vsel %vm198_vm0, %v2121_v17, 0.0  ;;  %v2128_v20 = vld [vmem:[%s2075_s22 + $0x58] sm:$0xff]  ;;  %v2131_v21 = vld [vmem:[%s2075_s22 + $0x50] sm:$0xff] }
  0x1a   : > { %v226_v18 = vsel %vm198_vm0, %v2118_v16, 0.0  ;;  %v232_v22 = vsel %vm198_vm0, %v2128_v20, 0.0  ;;  %v229_v23 = vsel %vm198_vm0, %v2131_v21, 0.0  ;;  %v2138_v24 = vld [vmem:[%s2075_s22 + $0x68] sm:$0xff]  ;;  %v2141_v25 = vld [vmem:[%s2075_s22 + $0x60] sm:$0xff]  ;;  %v2148_v28 = vld [vmem:[%s2075_s22 + $0x78] sm:$0xff] }
  0x1b   : > { %v238_v26 = vsel %vm198_vm0, %v2138_v24, 0.0  ;;  %v235_v27 = vsel %vm198_vm0, %v2141_v25, 0.0  ;;  %v2151_v29 = vld [vmem:[%s2075_s22 + $0x70] sm:$0xff]  ;;  %v244_v30 = vsel %vm198_vm0, %v2148_v28, 0.0  ;;  %v2158_v32 = vld [vmem:[%s2075_s22 + $0x88] sm:$0xff]  ;;  %v2161_v33 = vld [vmem:[%s2075_s22 + $0x80] sm:$0xff] }
  0x1c   : > { %209 = vadd.xlane.f32.xlu1 %v208_v6  ;;  %203 = vadd.xlane.f32.xlu0 %v202_v7  ;;  %v241_v31 = vsel %vm198_vm0, %v2151_v29, 0.0  ;;  %v250_v34 = vsel %vm198_vm0, %v2158_v32, 0.0  ;;  %v247_v35 = vsel %vm198_vm0, %v2161_v33, 0.0  ;;  %v2168_v36 = vld [vmem:[%s2075_s22 + $0x98] sm:$0xff]  ;;  %v2171_v37 = vld [vmem:[%s2075_s22 + $0x90] sm:$0xff]  ;;  %v2178_v40 = vld [vmem:[%s2075_s22 + $0xa8] sm:$0xff]  ;;  %v333_v6 = vmul.f32 %v2236_v62, %v2081_v1 }
  0x1d   : > { %v256_v38 = vsel %vm198_vm0, %v2168_v36, 0.0  ;;  %v253_v39 = vsel %vm198_vm0, %v2171_v37, 0.0  ;;  %v2181_v41 = vld [vmem:[%s2075_s22 + $0xa0] sm:$0xff]  ;;  %v262_v42 = vsel %vm198_vm0, %v2178_v40, 0.0  ;;  %v2188_v44 = vld [vmem:[%s2075_s22 + $0xb8] sm:$0xff]  ;;  %v2191_v45 = vld [vmem:[%s2075_s22 + $0xb0] sm:$0xff] }
  0x1e   : > { %v259_v43 = vsel %vm198_vm0, %v2181_v41, 0.0  ;;  %v268_v46 = vsel %vm198_vm0, %v2188_v44, 0.0  ;;  %v265_v47 = vsel %vm198_vm0, %v2191_v45, 0.0  ;;  %v2198_v48 = vld [vmem:[%s2075_s22 + $0xc8] sm:$0xff]  ;;  %v2201_v49 = vld [vmem:[%s2075_s22 + $0xc0] sm:$0xff]  ;;  %v2208_v52 = vld [vmem:[%s2075_s22 + $0xd8] sm:$0xff] }
  0x1f   : > { %v274_v50 = vsel %vm198_vm0, %v2198_v48, 0.0  ;;  %v271_v51 = vsel %vm198_vm0, %v2201_v49, 0.0  ;;  %v2211_v53 = vld [vmem:[%s2075_s22 + $0xd0] sm:$0xff]  ;;  %v280_v54 = vsel %vm198_vm0, %v2208_v52, 0.0  ;;  %v2218_v56 = vld [vmem:[%s2075_s22 + $0xe8] sm:$0xff]  ;;  %v2221_v57 = vld [vmem:[%s2075_s22 + $0xe0] sm:$0xff] }
  0x20   : > { %215 = vadd.xlane.f32.xlu1 %v214_v10  ;;  %212 = vadd.xlane.f32.xlu0 %v211_v11  ;;  %v277_v55 = vsel %vm198_vm0, %v2211_v53, 0.0  ;;  %v286_v58 = vsel %vm198_vm0, %v2218_v56, 0.0  ;;  %v283_v59 = vsel %vm198_vm0, %v2221_v57, 0.0  ;;  %v2228_v60 = vld [vmem:[%s2075_s22 + $0xf8] sm:$0xff]  ;;  %v2231_v61 = vld [vmem:[%s2075_s22 + $0xf0] sm:$0xff]  ;;  %v368_v7 = vsel %vm198_vm0, %v334_v4, 0.0 }
  0x21   : > { %v292_v63 = vsel %vm198_vm0, %v2228_v60, 0.0  ;;  %v289_v3 = vsel %vm198_vm0, %v2231_v61, 0.0  ;;  %v365_v10 = vsel %vm198_vm0, %v333_v6, 0.0  ;;  %v336_v11 = vmul.f32 %v2236_v62, %v2084_v2 }
  0x22   : > { %v350_v6 = vmul.f32 %v2236_v62, %v2158_v32 }
  0x24   : > { %221 = vadd.xlane.f32.xlu1 %v220_v14  ;;  %218 = vadd.xlane.f32.xlu0 %v217_v15  ;;  %v335_v14 = vmul.f32 %v2236_v62, %v2078_v0  ;;  %v374_v15 = vsel %vm198_vm0, %v336_v11, 0.0 }
  0x28   : > { %227 = vadd.xlane.f32.xlu1 %v226_v18  ;;  %224 = vadd.xlane.f32.xlu0 %v223_v19  ;;  %v371_v18 = vsel %vm198_vm0, %v335_v14, 0.0  ;;  %v338_v19 = vmul.f32 %v2236_v62, %v2098_v8  ;;  %v352_v14 = vmul.f32 %v2236_v62, %v2168_v36 }
  0x2c   : > { %233 = vadd.xlane.f32.xlu1 %v232_v22  ;;  %230 = vadd.xlane.f32.xlu0 %v229_v23  ;;  %v337_v22 = vmul.f32 %v2236_v62, %v2101_v9  ;;  %v380_v23 = vsel %vm198_vm0, %v338_v19, 0.0 }
  0x30   : > { %239 = vadd.xlane.f32.xlu1 %v238_v26  ;;  %236 = vadd.xlane.f32.xlu0 %v235_v27  ;;  %v377_v26 = vsel %vm198_vm0, %v337_v22, 0.0  ;;  %v340_v27 = vmul.f32 %v2236_v62, %v2108_v12  ;;  %v354_v22 = vmul.f32 %v2236_v62, %v2178_v40 }
  0x34   : > { %245 = vadd.xlane.f32.xlu1 %v244_v30  ;;  %242 = vadd.xlane.f32.xlu0 %v241_v31  ;;  %v339_v30 = vmul.f32 %v2236_v62, %v2111_v13  ;;  %v386_v31 = vsel %vm198_vm0, %v340_v27, 0.0 }
  0x38   : > { %251 = vadd.xlane.f32.xlu1 %v250_v34  ;;  %248 = vadd.xlane.f32.xlu0 %v247_v35  ;;  %v383_v34 = vsel %vm198_vm0, %v339_v30, 0.0  ;;  %v342_v35 = vmul.f32 %v2236_v62, %v2118_v16  ;;  %v356_v30 = vmul.f32 %v2236_v62, %v2188_v44 }
  0x3c   : > { %257 = vadd.xlane.f32.xlu1 %v256_v38  ;;  %254 = vadd.xlane.f32.xlu0 %v253_v39  ;;  %v341_v38 = vmul.f32 %v2236_v62, %v2121_v17  ;;  %v392_v39 = vsel %vm198_vm0, %v342_v35, 0.0 }
  0x40   : > { %263 = vadd.xlane.f32.xlu1 %v262_v42  ;;  %260 = vadd.xlane.f32.xlu0 %v259_v43  ;;  %v389_v42 = vsel %vm198_vm0, %v341_v38, 0.0  ;;  %v344_v43 = vmul.f32 %v2236_v62, %v2128_v20  ;;  %v358_v38 = vmul.f32 %v2236_v62, %v2198_v48 }
  0x44   : > { %269 = vadd.xlane.f32.xlu1 %v268_v46  ;;  %266 = vadd.xlane.f32.xlu0 %v265_v47  ;;  %v343_v46 = vmul.f32 %v2236_v62, %v2131_v21  ;;  %v398_v47 = vsel %vm198_vm0, %v344_v43, 0.0 }
  0x48   : > { %275 = vadd.xlane.f32.xlu1 %v274_v50  ;;  %272 = vadd.xlane.f32.xlu0 %v271_v51  ;;  %v395_v50 = vsel %vm198_vm0, %v343_v46, 0.0  ;;  %v346_v51 = vmul.f32 %v2236_v62, %v2138_v24  ;;  %v360_v46 = vmul.f32 %v2236_v62, %v2208_v52 }
  0x4c   : > { %281 = vadd.xlane.f32.xlu1 %v280_v54  ;;  %278 = vadd.xlane.f32.xlu0 %v277_v55  ;;  %v345_v54 = vmul.f32 %v2236_v62, %v2141_v25  ;;  %v404_v55 = vsel %vm198_vm0, %v346_v51, 0.0 }
  0x50   : > { %287 = vadd.xlane.f32.xlu1 %v286_v58  ;;  %284 = vadd.xlane.f32.xlu0 %v283_v59  ;;  %v401_v58 = vsel %vm198_vm0, %v345_v54, 0.0  ;;  %v348_v59 = vmul.f32 %v2236_v62, %v2148_v28  ;;  %v477_v54 = vmul.f32 %v2161_v33, %v2161_v33 }
  0x54   : > { %293 = vadd.xlane.f32.xlu1 %v292_v63  ;;  %290 = vadd.xlane.f32.xlu0 %v289_v3  ;;  %v347_v63 = vmul.f32 %v2236_v62, %v2151_v29  ;;  %v410_v3 = vsel %vm198_vm0, %v348_v59, 0.0 }
  0x56   : > { %v407_v4 = vsel %vm198_vm0, %v347_v63, 0.0  ;;  %v478_v63 = vmul.f32 %v2158_v32, %v2158_v32 }
  0x58   : > { %369 = vadd.xlane.f32.xlu1 %v368_v7  ;;  %366 = vadd.xlane.f32.xlu0 %v365_v10  ;;  %v349_v7 = vmul.f32 %v2236_v62, %v2161_v33  ;;  %v416_v10 = vsel %vm198_vm0, %v350_v6, 0.0  ;;  %v463_v6 = vmul.f32 %v2078_v0, %v2078_v0  ;;  %v481_v0 = vmul.f32 %v2181_v41, %v2181_v41 }
  0x5a   : > { %v413_v11 = vsel %vm198_vm0, %v349_v7, 0.0  ;;  %v499_v32 = vsel %vm198_vm0, %v463_v6, 0.0  ;;  %v489_v6 = vmul.f32 %v2221_v57, %v2221_v57 }
  0x5c   : > { %375 = vadd.xlane.f32.xlu1 %v374_v15  ;;  %372 = vadd.xlane.f32.xlu0 %v371_v18  ;;  %v351_v15 = vmul.f32 %v2236_v62, %v2171_v37  ;;  %v422_v18 = vsel %vm198_vm0, %v352_v14, 0.0  ;;  %v465_v14 = vmul.f32 %v2101_v9, %v2101_v9 }
  0x5e   : > { %v419_v19 = vsel %vm198_vm0, %v351_v15, 0.0  ;;  %v553_v15 = vsel %vm198_vm0, %v481_v0, 0.0 }
  0x60   : > { %381 = vadd.xlane.f32.xlu1 %v380_v23  ;;  %378 = vadd.xlane.f32.xlu0 %v377_v26  ;;  %v353_v23 = vmul.f32 %v2236_v62, %v2181_v41  ;;  %v428_v26 = vsel %vm198_vm0, %v354_v22, 0.0 }
  0x62   : > { %v425_v27 = vsel %vm198_vm0, %v353_v23, 0.0  ;;  %v483_v23 = vmul.f32 %v2191_v45, %v2191_v45 }
  0x64   : > { %387 = vadd.xlane.f32.xlu1 %v386_v31  ;;  %384 = vadd.xlane.f32.xlu0 %v383_v34  ;;  %v355_v31 = vmul.f32 %v2236_v62, %v2191_v45  ;;  %v434_v34 = vsel %vm198_vm0, %v356_v30, 0.0 }
  0x66   : > { %v431_v35 = vsel %vm198_vm0, %v355_v31, 0.0  ;;  %v484_v31 = vmul.f32 %v2188_v44, %v2188_v44 }
  0x68   : > { %393 = vadd.xlane.f32.xlu1 %v392_v39  ;;  %390 = vadd.xlane.f32.xlu0 %v389_v42  ;;  %v357_v39 = vmul.f32 %v2236_v62, %v2201_v49  ;;  %v440_v42 = vsel %vm198_vm0, %v358_v38, 0.0 }
  0x6a   : > { %v437_v43 = vsel %vm198_vm0, %v357_v39, 0.0  ;;  %v485_v39 = vmul.f32 %v2201_v49, %v2201_v49 }
  0x6c   : > { %399 = vadd.xlane.f32.xlu1 %v398_v47  ;;  %396 = vadd.xlane.f32.xlu0 %v395_v50  ;;  %v359_v47 = vmul.f32 %v2236_v62, %v2211_v53  ;;  %v446_v50 = vsel %vm198_vm0, %v360_v46, 0.0 }
  0x6e   : > { %v443_v51 = vsel %vm198_vm0, %v359_v47, 0.0  ;;  %v486_v47 = vmul.f32 %v2198_v48, %v2198_v48 }
  0x70   : > { %405 = vadd.xlane.f32.xlu1 %v404_v55  ;;  %402 = vadd.xlane.f32.xlu0 %v401_v58  ;;  %v461_v55 = vmul.f32 %v2081_v1, %v2081_v1  ;;  %v541_v58 = vsel %vm198_vm0, %v477_v54, 0.0  ;;  %v479_v1 = vmul.f32 %v2171_v37, %v2171_v37 }
  0x72   : > { %v493_v59 = vsel %vm198_vm0, %v461_v55, 0.0  ;;  %v547_v7 = vsel %vm198_vm0, %v479_v1, 0.0  ;;  %v487_v55 = vmul.f32 %v2211_v53, %v2211_v53 }
  0x74   : > { %411 = vadd.xlane.f32.xlu1 %v410_v3  ;;  %408 = vadd.xlane.f32.xlu0 %v407_v4  ;;  %v462_v3 = vmul.f32 %v2091_v5, %v2091_v5  ;;  %v544_v4 = vsel %vm198_vm0, %v478_v63, 0.0  ;;  %v480_v5 = vmul.f32 %v2168_v36, %v2168_v36  ;;  %v505_v36 = vsel %vm198_vm0, %v465_v14, 0.0 }
  0x76   : > { %v496_v33 = vsel %vm198_vm0, %v462_v3, 0.0  ;;  %v488_v3 = vmul.f32 %v2208_v52, %v2208_v52 }
  0x78   : > { %417 = vadd.xlane.f32.xlu1 %v416_v10  ;;  %414 = vadd.xlane.f32.xlu0 %v413_v11  ;;  %v464_v10 = vmul.f32 %v2084_v2, %v2084_v2  ;;  %v550_v11 = vsel %vm198_vm0, %v480_v5, 0.0  ;;  %v482_v2 = vmul.f32 %v2178_v40, %v2178_v40 }
  0x7a   : > { %v502_v37 = vsel %vm198_vm0, %v464_v10, 0.0  ;;  %v556_v9 = vsel %vm198_vm0, %v482_v2, 0.0  ;;  %v490_v10 = vmul.f32 %v2218_v56, %v2218_v56 }
  0x7c   : > { %423 = vadd.xlane.f32.xlu1 %v422_v18  ;;  %420 = vadd.xlane.f32.xlu0 %v419_v19  ;;  %v466_v18 = vmul.f32 %v2098_v8, %v2098_v8  ;;  %v580_v0 = vsel %vm198_vm0, %v490_v10, 0.0 }
  0x7e   : > { %v508_v22 = vsel %vm198_vm0, %v466_v18, 0.0 }
  0x80   : > { %429 = vadd.xlane.f32.xlu1 %v428_v26  ;;  %426 = vadd.xlane.f32.xlu0 %v425_v27  ;;  %v467_v26 = vmul.f32 %v2111_v13, %v2111_v13  ;;  %v559_v27 = vsel %vm198_vm0, %v483_v23, 0.0  ;;  %v476_v23 = vmul.f32 %v2148_v28, %v2148_v28 }
  0x82   : > { %v511_v30 = vsel %vm198_vm0, %v467_v26, 0.0 }
  0x84   : > { %435 = vadd.xlane.f32.xlu1 %v434_v34  ;;  %432 = vadd.xlane.f32.xlu0 %v431_v35  ;;  %v468_v34 = vmul.f32 %v2108_v12, %v2108_v12  ;;  %v562_v35 = vsel %vm198_vm0, %v484_v31, 0.0  ;;  %v361_v31 = vmul.f32 %v2236_v62, %v2221_v57 }
  0x86   : > { %v514_v38 = vsel %vm198_vm0, %v468_v34, 0.0  ;;  %v362_v34 = vmul.f32 %v2236_v62, %v2218_v56 }
  0x88   : > { %441 = vadd.xlane.f32.xlu1 %v440_v42  ;;  %438 = vadd.xlane.f32.xlu0 %v437_v43  ;;  %v469_v42 = vmul.f32 %v2121_v17, %v2121_v17  ;;  %v565_v43 = vsel %vm198_vm0, %v485_v39, 0.0  ;;  %v452_v39 = vsel %vm198_vm0, %v362_v34, 0.0 }
  0x8a   : > { %v517_v46 = vsel %vm198_vm0, %v469_v42, 0.0  ;;  %v363_v42 = vmul.f32 %v2236_v62, %v2231_v61 }
  0x8c   : > { %447 = vadd.xlane.f32.xlu1 %v446_v50  ;;  %444 = vadd.xlane.f32.xlu0 %v443_v51  ;;  %v470_v50 = vmul.f32 %v2118_v16, %v2118_v16  ;;  %v568_v51 = vsel %vm198_vm0, %v486_v47, 0.0 }
  0x8e   : > { %v520_v54 = vsel %vm198_vm0, %v470_v50, 0.0 }
  0x90   : > { %542 = vadd.xlane.f32.xlu1 %v541_v58  ;;  %494 = vadd.xlane.f32.xlu0 %v493_v59  ;;  %v471_v58 = vmul.f32 %v2131_v21, %v2131_v21  ;;  %v571_v59 = vsel %vm198_vm0, %v487_v55, 0.0 }
  0x92   : > { %v523_v63 = vsel %vm198_vm0, %v471_v58, 0.0 }
  0x94   : > { %545 = vadd.xlane.f32.xlu1 %v544_v4  ;;  %497 = vadd.xlane.f32.xlu0 %v496_v33  ;;  %v472_v4 = vmul.f32 %v2128_v20, %v2128_v20  ;;  %v574_v33 = vsel %vm198_vm0, %v488_v3, 0.0 }
  0x96   : > { %v526_v1 = vsel %vm198_vm0, %v472_v4, 0.0 }
  0x98   : > { %548 = vadd.xlane.f32.xlu1 %v547_v7  ;;  %500 = vadd.xlane.f32.xlu0 %v499_v32  ;;  %v473_v7 = vmul.f32 %v2141_v25, %v2141_v25  ;;  %v577_v32 = vsel %vm198_vm0, %v489_v6, 0.0 }
  0x9a   : > { %v529_v5 = vsel %vm198_vm0, %v473_v7, 0.0 }
  0x9c   : > { %551 = vadd.xlane.f32.xlu1 %v550_v11  ;;  %503 = vadd.xlane.f32.xlu0 %v502_v37  ;;  %v474_v11 = vmul.f32 %v2138_v24, %v2138_v24 }
  0x9e   : > { %v532_v14 = vsel %vm198_vm0, %v474_v11, 0.0 }
  0xa0   : > { %554 = vadd.xlane.f32.xlu1 %v553_v15  ;;  %506 = vadd.xlane.f32.xlu0 %v505_v36  ;;  %v491_v15 = vmul.f32 %v2231_v61, %v2231_v61  ;;  %v475_v36 = vmul.f32 %v2151_v29, %v2151_v29 }
  0xa1   : > { %v2360_v19 = vpop.xlane.xlu1 %206  ;;  %v2362_v41 = vpop.xlane.xlu0 %200 }
  0xa2   : > { %v583_v18 = vsel %vm198_vm0, %v491_v15, 0.0 }
  0xa4   : > { %557 = vadd.xlane.f32.xlu1 %v556_v9  ;;  %509 = vadd.xlane.f32.xlu0 %v508_v22  ;;  %v535_v9 = vsel %vm198_vm0, %v475_v36, 0.0  ;;  %v492_v22 = vmul.f32 %v2228_v60, %v2228_v60 }
  0xa5   : > { %v2370_v40 = vpop.xlane.xlu1 %209  ;;  %v2372_v8 = vpop.xlane.xlu0 %203 }
  0xa8   : > { %560 = vadd.xlane.f32.xlu1 %v559_v27  ;;  %512 = vadd.xlane.f32.xlu0 %v511_v30  ;;  %v586_v27 = vsel %vm198_vm0, %v492_v22, 0.0  ;;  %v538_v30 = vsel %vm198_vm0, %v476_v23, 0.0 }
  0xa9   : > { %v2380_v45 = vpop.xlane.xlu1 %215  ;;  %v2382_v13 = vpop.xlane.xlu0 %212 }
  0xac   : > { %563 = vadd.xlane.f32.xlu1 %v562_v35  ;;  %515 = vadd.xlane.f32.xlu0 %v514_v38  ;;  %v449_v38 = vsel %vm198_vm0, %v361_v31, 0.0 }
  0xad   : > { %v2390_v44 = vpop.xlane.xlu1 %221  ;;  %v2392_v12 = vpop.xlane.xlu0 %218 }
  0xb0   : > { %566 = vadd.xlane.f32.xlu1 %v565_v43  ;;  %518 = vadd.xlane.f32.xlu0 %v517_v46  ;;  %v364_v43 = vmul.f32 %v2236_v62, %v2228_v60  ;;  %v455_v46 = vsel %vm198_vm0, %v363_v42, 0.0 }
  0xb1   : > { %v2400_v49 = vpop.xlane.xlu1 %227  ;;  %v2402_v17 = vpop.xlane.xlu0 %224 }
  0xb2   : > { %v458_v47 = vsel %vm198_vm0, %v364_v43, 0.0  ;;  %v295_v43 = vmul.f32 0.05263158, %v2362_v41  ;;  %v299_v41 = vmul.f32 0.05263158, %v2382_v13 }
  0xb4   : > { %569 = vadd.xlane.f32.xlu1 %v568_v51  ;;  %521 = vadd.xlane.f32.xlu0 %v520_v54 }
  0xb5   : > { %v2410_v48 = vpop.xlane.xlu1 %233  ;;  %v2412_v16 = vpop.xlane.xlu0 %230 }
  0xb8   : > { %572 = vadd.xlane.f32.xlu1 %v571_v59  ;;  %524 = vadd.xlane.f32.xlu0 %v523_v63 }
  0xb9   : > { %v2420_v53 = vpop.xlane.xlu1 %239  ;;  %v2422_v21 = vpop.xlane.xlu0 %236 }
  0xbc   : > { %575 = vadd.xlane.f32.xlu1 %v574_v33  ;;  %527 = vadd.xlane.f32.xlu0 %v526_v1 }
  0xbd   : > { %v2430_v52 = vpop.xlane.xlu1 %245  ;;  %v2432_v20 = vpop.xlane.xlu0 %242 }
  0xc0   : > { %578 = vadd.xlane.f32.xlu1 %v577_v32  ;;  %530 = vadd.xlane.f32.xlu0 %v529_v5 }
  0xc1   : > { %v2440_v37 = vpop.xlane.xlu1 %251  ;;  %v2442_v25 = vpop.xlane.xlu0 %248 }
  0xc4   : > { %581 = vadd.xlane.f32.xlu1 %v580_v0  ;;  %533 = vadd.xlane.f32.xlu0 %v532_v14 }
  0xc5   : > { %v2450_v2 = vpop.xlane.xlu1 %257  ;;  %v2452_v24 = vpop.xlane.xlu0 %254 }
  0xc8   : > { %584 = vadd.xlane.f32.xlu1 %v583_v18  ;;  %536 = vadd.xlane.f32.xlu0 %v535_v9 }
  0xc9   : > { %v2460_v26 = vpop.xlane.xlu1 %263  ;;  %v2462_v29 = vpop.xlane.xlu0 %260 }
  0xcc   : > { %587 = vadd.xlane.f32.xlu1 %v586_v27  ;;  %539 = vadd.xlane.f32.xlu0 %v538_v30 }
  0xcd   : > { %v2470_v35 = vpop.xlane.xlu1 %269  ;;  %v2472_v28 = vpop.xlane.xlu0 %266 }
  0xd0   : > { %450 = vadd.xlane.f32.xlu0 %v449_v38  ;;  %453 = vadd.xlane.f32.xlu1 %v452_v39 }
  0xd1   : > { %v2480_v57 = vpop.xlane.xlu1 %275  ;;  %v2482_v56 = vpop.xlane.xlu0 %272 }
  0xd4   : > { %456 = vadd.xlane.f32.xlu0 %v455_v46  ;;  %459 = vadd.xlane.f32.xlu1 %v458_v47 }
  0xd5   : > { %v2486_v50 = vpop.xlane.xlu1 %281  ;;  %v2488_v51 = vpop.xlane.xlu0 %278 }
  0xd9   : > { %v2490_v61 = vpop.xlane.xlu1 %287  ;;  %v2492_v54 = vpop.xlane.xlu0 %284 }
  0xdd   : > { %v2494_v60 = vpop.xlane.xlu1 %293  ;;  %v2496_v55 = vpop.xlane.xlu0 %290 }
  0xde   : > { %3158 = vst [vmem:[#allocation3_spill] sm:$0xff] %v2494_v60  ;;  %v304_v60 = vmul.f32 0.05263158, %v2400_v49 }
  0xe1   : > { %v2498_v58 = vpop.xlane.xlu1 %369  ;;  %v2500_v59 = vpop.xlane.xlu0 %366 }
  0xe5   : > { %v2502_v63 = vpop.xlane.xlu1 %375  ;;  %v2504_v3 = vpop.xlane.xlu0 %372 }
  0xe9   : > { %v2506_v4 = vpop.xlane.xlu1 %381  ;;  %v2508_v33 = vpop.xlane.xlu0 %378 }
  0xed   : > { %v2510_v1 = vpop.xlane.xlu1 %387  ;;  %v2512_v6 = vpop.xlane.xlu0 %384 }
  0xee   : > { %3159 = vst [vmem:[#allocation4_spill] sm:$0xff] %v2510_v1 }
  0xf1   : > { %v2514_v7 = vpop.xlane.xlu1 %393  ;;  %v2516_v32 = vpop.xlane.xlu0 %390 }
  0xf2   : > { %3160 = vst [vmem:[#allocation5_spill] sm:$0xff] %v2514_v7  ;;  %3161 = vst [vmem:[#allocation6_spill] sm:$0xff] %v2516_v32 }
  0xf5   : > { %v2518_v5 = vpop.xlane.xlu1 %399  ;;  %v2520_v10 = vpop.xlane.xlu0 %396 }
  0xf6   : > { %3162 = vst [vmem:[#allocation7_spill] sm:$0xff] %v2518_v5  ;;  %3163 = vst [vmem:[#allocation8_spill] sm:$0xff] %v2520_v10  ;;  %v297_v5 = vmul.f32 0.05263158, %v2360_v19  ;;  %v301_v19 = vmul.f32 0.05263158, %v2392_v12 }
  0xf9   : > { %v2522_v11 = vpop.xlane.xlu1 %405  ;;  %v2524_v0 = vpop.xlane.xlu0 %402 }
  0xfa   : > { %3164 = vst [vmem:[#allocation9_spill] sm:$0xff] %v2522_v11  ;;  %3165 = vst [vmem:[#allocation10_spill] sm:$0xff] %v2524_v0 }
  0xfd   : > { %v2526_v14 = vpop.xlane.xlu1 %411  ;;  %v2528_v15 = vpop.xlane.xlu0 %408 }
  0xfe   : > { %3166 = vst [vmem:[#allocation11_spill] sm:$0xff] %v2526_v14  ;;  %3167 = vst [vmem:[#allocation12_spill] sm:$0xff] %v2528_v15  ;;  %v621_v14 = vmul.f32 %v295_v43, %v295_v43  ;;  %v296_v15 = vmul.f32 0.05263158, %v2372_v8  ;;  %v623_v43 = vmul.f32 %v297_v5, %v297_v5  ;;  %v302_v8 = vmul.f32 0.05263158, %v2390_v44 }
  0xff   : > { %v312_v5 = vmul.f32 0.05263158, %v2440_v37 }
 0x100   : > { %v622_v32 = vmul.f32 %v296_v15, %v296_v15  ;;  %v2568_v15 = vmul.f32 %v302_v8, %v302_v8  ;;  %v314_v8 = vmul.f32 0.05263158, %v2450_v2 }
 0x101   : > { %v2530_v36 = vpop.xlane.xlu1 %417  ;;  %v2532_v18 = vpop.xlane.xlu0 %414 }
 0x105   : > { %v2534_v9 = vpop.xlane.xlu1 %423  ;;  %v2536_v22 = vpop.xlane.xlu0 %420 }
 0x109   : > { %v2538_v23 = vpop.xlane.xlu1 %429  ;;  %v2540_v27 = vpop.xlane.xlu0 %426 }
 0x10a   : > { %3168 = vst [vmem:[#allocation13_spill] sm:$0xff] %v2538_v23 }
 0x10d   : > { %v2542_v30 = vpop.xlane.xlu1 %435  ;;  %v2544_v31 = vpop.xlane.xlu0 %432 }
 0x10e   : > { %3169 = vst [vmem:[#allocation14_spill] sm:$0xff] %v2542_v30 }
 0x111   : > { %v2546_v34 = vpop.xlane.xlu1 %441  ;;  %v2548_v38 = vpop.xlane.xlu0 %438 }
 0x112   : > { %3170 = vst [vmem:[#allocation15_spill] sm:$0xff] %v2546_v34  ;;  %3171 = vst [vmem:[#allocation16_spill] sm:$0xff] %v2548_v38  ;;  %v298_v34 = vmul.f32 0.05263158, %v2370_v40 }
 0x115   : > { %v2550_v39 = vpop.xlane.xlu1 %447  ;;  %v2552_v42 = vpop.xlane.xlu0 %444 }
 0x116   : > { %3172 = vst [vmem:[#allocation17_spill] sm:$0xff] %v2550_v39  ;;  %3173 = vst [vmem:[#allocation18_spill] sm:$0xff] %v2552_v42  ;;  %v300_v42 = vmul.f32 0.05263158, %v2380_v45 }
 0x118   : > { %v2565_v13 = vmul.f32 %v300_v42, %v300_v42 }
 0x119   : > { %v543_v46 = vpop.xlane.xlu1 %542  ;;  %v495_v47 = vpop.xlane.xlu0 %494 }
 0x11a   : > { %v589_v11 = vmul.f32 0.05263158, %v495_v47  ;;  %v605_v12 = vmul.f32 0.05263158, %v543_v46  ;;  %v2579_v46 = vmul.f32 0.05263158, %v2410_v48 }
 0x11c   : > { %v653_v0 = vsub.f32 %v589_v11, %v621_v14  ;;  %v624_v14 = vmul.f32 %v298_v34, %v298_v34  ;;  %v313_v34 = vmul.f32 0.05263158, %v2452_v24 }
 0x11d   : > { %v546_v10 = vpop.xlane.xlu1 %545  ;;  %v498_v7 = vpop.xlane.xlu0 %497 }
 0x11e   : > { %v685_v38 = vmax.f32 %v653_v0, 0.0  ;;  %v590_v39 = vmul.f32 0.05263158, %v498_v7  ;;  %v303_v0 = vmul.f32 0.05263158, %v2402_v17  ;;  %v2573_v17 = vmul.f32 %v304_v60, %v304_v60 }
 0x11f   : > { %v311_v7 = vmul.f32 0.05263158, %v2442_v25  ;;  %v606_v25 = vmul.f32 0.05263158, %v546_v10  ;;  %v315_v10 = vmul.f32 0.05263158, %v2462_v29 }
 0x120   : > { %v717_v1 = vadd.f32 1e-05, %v685_v38  ;;  %v654_v30 = vsub.f32 %v590_v39, %v622_v32  ;;  %v625_v32 = vmul.f32 %v299_v41, %v299_v41  ;;  %v2571_v39 = vmul.f32 %v301_v19, %v301_v19 }
 0x121   : > { %v549_v47 = vpop.xlane.xlu1 %548  ;;  %v501_v11 = vpop.xlane.xlu0 %500  ;;  %v2575_v42 = vmul.f32 %v303_v0, %v303_v0  ;;  %v637_v41 = vmul.f32 %v311_v7, %v311_v7 }
 0x122   : > { %v686_v40 = vmax.f32 %v654_v30, 0.0  ;;  %1806 = vrsqrt.f32 %v717_v1  ;;  %v591_v45 = vmul.f32 0.05263158, %v501_v11  ;;  %v638_v11 = vmul.f32 %v312_v5, %v312_v5 }
 0x123   : > { %v669_v19 = vsub.f32 %v605_v12, %v637_v41  ;;  %v318_v5 = vmul.f32 0.05263158, %v2470_v35  ;;  %v317_v12 = vmul.f32 0.05263158, %v2472_v28  ;;  %v641_v41 = vmul.f32 %v315_v10, %v315_v10 }
 0x124   : > { %v718_v44 = vadd.f32 1e-05, %v686_v40  ;;  %v655_v38 = vsub.f32 %v591_v45, %v623_v43  ;;  %v607_v40 = vmul.f32 0.05263158, %v549_v47  ;;  %v639_v43 = vmul.f32 %v313_v34, %v313_v34 }
 0x125   : > { %v552_v49 = vpop.xlane.xlu1 %551  ;;  %v504_v30 = vpop.xlane.xlu0 %503  ;;  %v670_v0 = vsub.f32 %v606_v25, %v638_v11  ;;  %v640_v47 = vmul.f32 %v314_v8, %v314_v8  ;;  %v2585_v34 = vmul.f32 0.05263158, %v2412_v16  ;;  %v643_v28 = vmul.f32 %v317_v12, %v317_v12 }
 0x126   : > { %v592_v1 = vmul.f32 0.05263158, %v504_v30  ;;  %1808 = vrsqrt.f32 %v718_v44  ;;  %v687_v37 = vmax.f32 %v655_v38, 0.0  ;;  %v608_v30 = vmul.f32 0.05263158, %v552_v49 }
 0x127   : > { %v316_v44 = vmul.f32 0.05263158, %v2460_v26 }
 0x128   : > { %v656_v24 = vsub.f32 %v592_v1, %v624_v14  ;;  %v719_v45 = vadd.f32 1e-05, %v687_v37  ;;  %v671_v14 = vsub.f32 %v607_v40, %v639_v43  ;;  %v701_v1 = vmax.f32 %v669_v19, 0.0 }
 0x129   : > { %v555_v60 = vpop.xlane.xlu1 %554  ;;  %v507_v23 = vpop.xlane.xlu0 %506  ;;  %v702_v37 = vmax.f32 %v670_v0, 0.0  ;;  %v672_v26 = vsub.f32 %v608_v30, %v640_v47  ;;  %v642_v35 = vmul.f32 %v316_v44, %v316_v44 }
 0x12a   : > { %v688_v7 = vmax.f32 %v656_v24, 0.0  ;;  %1810 = vrsqrt.f32 %v719_v45  ;;  %v593_v2 = vmul.f32 0.05263158, %v507_v23  ;;  %v609_v38 = vmul.f32 0.05263158, %v555_v60 }
 0x12b   : > { %v2588_v24 = vmul.f32 %v318_v5, %v318_v5  ;;  %v703_v40 = vmax.f32 %v671_v14, 0.0  ;;  %v733_v19 = vadd.f32 1e-05, %v701_v1  ;;  %v734_v0 = vadd.f32 1e-05, %v702_v37 }
 0x12c   : > { %v720_v48 = vadd.f32 1e-05, %v688_v7  ;;  %v657_v29 = vsub.f32 %v593_v2, %v625_v32  ;;  %v673_v43 = vsub.f32 %v609_v38, %v641_v41  ;;  %v704_v30 = vmax.f32 %v672_v26, 0.0 }
 0x12d   : > { %v558_v25 = vpop.xlane.xlu1 %557  ;;  %v510_v49 = vpop.xlane.xlu0 %509  ;;  %v319_v2 = vmul.f32 0.05263158, %v2482_v56  ;;  %v735_v38 = vadd.f32 1e-05, %v703_v40 }
 0x12e   : > { %v594_v11 = vmul.f32 0.05263158, %v510_v49  ;;  %1812 = vrsqrt.f32 %v720_v48  ;;  %v689_v23 = vmax.f32 %v657_v29, 0.0  ;;  %v610_v16 = vmul.f32 0.05263158, %v558_v25 }
 0x12f   : > { %v1807_v8 = vpop.eup %1806  ;;  %v736_v41 = vadd.f32 1e-05, %v704_v30 }
 0x130   : > { %v658_v45 = vsub.f32 %v594_v11, %v2565_v13  ;;  %v721_v32 = vadd.f32 1e-05, %v689_v23  ;;  %v781_v10 = vmul.f32 %v1807_v8, %v2500_v59  ;;  %v705_v13 = vmax.f32 %v673_v43, 0.0 }
 0x131   : > { %v561_v60 = vpop.xlane.xlu1 %560  ;;  %v513_v7 = vpop.xlane.xlu0 %512  ;;  %v674_v12 = vsub.f32 %v610_v16, %v642_v35  ;;  %v2599_v11 = vmul.f32 %v2579_v46, %v2579_v46 }
 0x132   : > { %v690_v44 = vmax.f32 %v658_v45, 0.0  ;;  %v611_v5 = vmul.f32 0.05263158, %v561_v60  ;;  %1814 = vrsqrt.f32 %v721_v32  ;;  %v595_v47 = vmul.f32 0.05263158, %v513_v7 }
 0x133   : > { %v813_v14 = vadd.f32 %v2236_v62, %v781_v10  ;;  %v1809_v48 = vpop.eup %1808  ;;  %1816 = vrsqrt.f32 %v733_v19  ;;  %v737_v8 = vadd.f32 1e-05, %v705_v13  ;;  %v706_v40 = vmax.f32 %v674_v12, 0.0 }
 0x134   : > { %v722_v1 = vadd.f32 1e-05, %v690_v44  ;;  %v675_v29 = vsub.f32 %v611_v5, %v643_v28  ;;  %v659_v25 = vsub.f32 %v595_v47, %v2571_v39  ;;  %v782_v56 = vmul.f32 %v1809_v48, %v2498_v58 }
 0x135   : > { %877 = vrot.lane.b32.xlu0 %v813_v14, %s2023_s25  ;;  %v564_v59 = vpop.xlane.xlu1 %563  ;;  %v516_v49 = vpop.xlane.xlu0 %515  ;;  %1818 = vrsqrt.f32 %v734_v0  ;;  %v308_v32 = vmul.f32 0.05263158, %v2420_v53  ;;  %v645_v60 = vmul.f32 %v319_v2, %v319_v2  ;;  %v320_v10 = vmul.f32 0.05263158, %v2480_v57 }
 0x136   : > { %v612_v37 = vmul.f32 0.05263158, %v564_v59  ;;  %v596_v26 = vmul.f32 0.05263158, %v516_v49  ;;  %1820 = vrsqrt.f32 %v722_v1  ;;  %v691_v35 = vmax.f32 %v659_v25, 0.0 }
 0x137   : > { %v814_v23 = vadd.f32 %v2236_v62, %v782_v56  ;;  %v1811_v39 = vpop.eup %1810  ;;  %1822 = vrsqrt.f32 %v735_v38  ;;  %v707_v16 = vmax.f32 %v675_v29, 0.0  ;;  %v2614_v57 = vmul.f32 %v2585_v34, %v2585_v34 }
 0x138   : > { %v676_v43 = vsub.f32 %v612_v37, %v2588_v24  ;;  %v723_v58 = vadd.f32 1e-05, %v691_v35  ;;  %v660_v45 = vsub.f32 %v596_v26, %v2568_v15  ;;  %v783_v46 = vmul.f32 %v1811_v39, %v2504_v3 }
 0x139   : > { %879 = vrot.lane.b32.xlu1 %v814_v23, %s2023_s25  ;;  %v567_v28 = vpop.xlane.xlu1 %566  ;;  %v519_v19 = vpop.xlane.xlu0 %518  ;;  %1824 = vrsqrt.f32 %v736_v41  ;;  %v738_v15 = vadd.f32 1e-05, %v706_v40  ;;  %v739_v47 = vadd.f32 1e-05, %v707_v16  ;;  %v2616_v38 = vmul.f32 %v308_v32, %v308_v32 }
 0x13a   : > { %v613_v7 = vmul.f32 0.05263158, %v567_v28  ;;  %1826 = vrsqrt.f32 %v723_v58  ;;  %v597_v0 = vmul.f32 0.05263158, %v519_v19  ;;  %v815_v24 = vadd.f32 %v2236_v62, %v783_v46 }
 0x13b   : > { %v1813_v30 = vpop.eup %1812  ;;  %1828 = vrsqrt.f32 %v737_v8  ;;  %v708_v44 = vmax.f32 %v676_v43, 0.0  ;;  %v692_v14 = vmax.f32 %v660_v45, 0.0  ;;  %v307_v13 = vmul.f32 0.05263158, %v2422_v21 }
 0x13c   : > { %v677_v5 = vsub.f32 %v613_v7, %v645_v60  ;;  %v661_v3 = vsub.f32 %v597_v0, %v2575_v42  ;;  %v784_v48 = vmul.f32 %v1813_v30, %v2502_v63  ;;  %v646_v1 = vmul.f32 %v320_v10, %v320_v10 }
 0x13d   : > { %881 = vrot.lane.b32.xlu1 %v815_v24, %s2023_s25  ;;  %v570_v53 = vpop.xlane.xlu1 %569  ;;  %v522_v2 = vpop.xlane.xlu0 %521  ;;  %v322_v29 = vmul.f32 0.05263158, %v2486_v50  ;;  %v321_v49 = vmul.f32 0.05263158, %v2488_v51  ;;  %1830 = vrsqrt.f32 %v738_v15  ;;  %v740_v63 = vadd.f32 1e-05, %v708_v44 }
 0x13e   : > { %v614_v12 = vmul.f32 0.05263158, %v570_v53  ;;  %v598_v25 = vmul.f32 0.05263158, %v522_v2  ;;  %v816_v42 = vadd.f32 %v2236_v62, %v784_v48  ;;  %v709_v56 = vmax.f32 %v677_v5, 0.0 }
 0x13f   : > { %v1815_v59 = vpop.eup %1814  ;;  %1832 = vrsqrt.f32 %v739_v47  ;;  %v724_v34 = vadd.f32 1e-05, %v692_v14  ;;  %v693_v41 = vmax.f32 %v661_v3, 0.0  ;;  %v2624_v50 = vmul.f32 %v307_v13, %v307_v13 }
 0x140   : > { %v785_v26 = vmul.f32 %v1815_v59, %v2508_v33  ;;  %v1817_v35 = vpop.eup %1816  ;;  %v2627_v23 = vmul.f32 0.05263158, %v2430_v52  ;;  %v678_v39 = vsub.f32 %v614_v12, %v646_v1  ;;  %v309_v40 = vmul.f32 0.05263158, %v2432_v20 }
 0x141   : > { %883 = vrot.lane.b32.xlu1 %v816_v42, %s2023_s25  ;;  %v573_v37 = vpop.xlane.xlu1 %572  ;;  %v525_v21 = vpop.xlane.xlu0 %524  ;;  %v662_v43 = vsub.f32 %v598_v25, %v2573_v17  ;;  %v648_v28 = vmul.f32 %v322_v29, %v322_v29  ;;  %v647_v19 = vmul.f32 %v321_v49, %v321_v49  ;;  %1834 = vrsqrt.f32 %v740_v63 }
 0x142   : > { %v615_v51 = vmul.f32 0.05263158, %v573_v37  ;;  %v1819_v8 = vpop.eup %1818  ;;  %v599_v16 = vmul.f32 0.05263158, %v525_v21  ;;  %v817_v58 = vadd.f32 %v2236_v62, %v785_v26  ;;  %v741_v33 = vadd.f32 1e-05, %v709_v56 }
 0x143   : > { %v1821_v45 = vpop.eup %1820  ;;  %1836 = vrsqrt.f32 %v724_v34  ;;  %v725_v32 = vadd.f32 1e-05, %v693_v41  ;;  %v797_v20 = vmul.f32 %v1817_v35, %v2532_v18  ;;  %v710_v17 = vmax.f32 %v678_v39, 0.0 }
 0x144   : > { %v1823_v46 = vpop.eup %1822  ;;  %885 = vrot.lane.b32.xlu0 %v817_v58, %s2023_s25  ;;  %v786_v7 = vmul.f32 %v1821_v45, %v2506_v4  ;;  %v679_v10 = vsub.f32 %v615_v51, %v647_v19  ;;  %v2635_v15 = vmul.f32 %v309_v40, %v309_v40  ;;  %v694_v44 = vmax.f32 %v662_v43, 0.0 }
 0x145   : > { %v576_v52 = vpop.xlane.xlu1 %575  ;;  %v528_v60 = vpop.xlane.xlu0 %527  ;;  %v663_v5 = vsub.f32 %v599_v16, %v2614_v57  ;;  %v323_v3 = vmul.f32 0.05263158, %v2492_v54  ;;  %1838 = vrsqrt.f32 %v741_v33  ;;  %v798_v4 = vmul.f32 %v1819_v8, %v2530_v36 }
 0x146   : > { %v616_v0 = vmul.f32 0.05263158, %v576_v52  ;;  %v600_v24 = vmul.f32 0.05263158, %v528_v60  ;;  %v1825_v30 = vpop.eup %1824  ;;  %v818_v47 = vadd.f32 %v2236_v62, %v786_v7  ;;  %1840 = vrsqrt.f32 %v725_v32  ;;  %v3174_v32 = vld [vmem:[#allocation13_spill] sm:$0xff] }
 0x147   : > { %v1827_v14 = vpop.eup %1826  ;;  %v799_v57 = vmul.f32 %v1823_v46, %v2536_v22  ;;  %v742_v1 = vadd.f32 1e-05, %v710_v17  ;;  %v711_v29 = vmax.f32 %v679_v10, 0.0  ;;  %v829_v54 = vadd.f32 %v2236_v62, %v797_v20 }
 0x148   : > { %v680_v53 = vsub.f32 %v616_v0, %v648_v28  ;;  %v1829_v18 = vpop.eup %1828  ;;  %v664_v2 = vsub.f32 %v600_v24, %v2599_v11  ;;  %887 = vrot.lane.b32.xlu1 %v818_v47, %s2023_s25  ;;  %v787_v12 = vmul.f32 %v1827_v14, %v2512_v6  ;;  %v726_v42 = vadd.f32 1e-05, %v694_v44  ;;  %v3176_v47 = vld [vmem:[#allocation14_spill] sm:$0xff] }
 0x149   : > { %v579_v48 = vpop.xlane.xlu1 %578  ;;  %v531_v13 = vpop.xlane.xlu0 %530  ;;  %v695_v59 = vmax.f32 %v663_v5, 0.0  ;;  %v324_v11 = vmul.f32 0.05263158, %v2490_v61  ;;  %v649_v63 = vmul.f32 %v323_v3, %v323_v3  ;;  %v800_v34 = vmul.f32 %v1825_v30, %v2534_v9  ;;  %v3175_v30 = vld [vmem:[#allocation3_spill] sm:$0xff] }
 0x14a   : > { %v617_v25 = vmul.f32 0.05263158, %v579_v48  ;;  %v601_v36 = vmul.f32 0.05263158, %v531_v13  ;;  %v819_v49 = vadd.f32 %v2236_v62, %v787_v12  ;;  %v712_v56 = vmax.f32 %v680_v53, 0.0  ;;  %v1831_v41 = vpop.eup %1830 }
 0x14b   : > { %v696_v6 = vmax.f32 %v664_v2, 0.0  ;;  %v831_v21 = vadd.f32 %v2236_v62, %v799_v57  ;;  %v830_v26 = vadd.f32 %v2236_v62, %v798_v4  ;;  %v801_v35 = vmul.f32 %v1829_v18, %v2540_v27  ;;  %v2659_v62 = vld [vmem:[%s3154_s0] ss:$0 sm:$0xff] }
 0x14c   : > { %909 = vrot.lane.b32.xlu1 %v829_v54, %s2023_s25  ;;  %889 = vrot.lane.b32.xlu0 %v819_v49, %s2023_s25  ;;  %v1833_v39 = vpop.eup %1832  ;;  %1842 = vrsqrt.f32 %v742_v1  ;;  %v743_v61 = vadd.f32 1e-05, %v711_v29  ;;  %v681_v51 = vsub.f32 %v617_v25, %v649_v63  ;;  %v727_v9 = vadd.f32 1e-05, %v695_v59  ;;  %v3178_v63 = vld [vmem:[#allocation16_spill] sm:$0xff] }
 0x14d   : > { %v582_v22 = vpop.xlane.xlu1 %581  ;;  %v534_v37 = vpop.xlane.xlu0 %533  ;;  %1844 = vrsqrt.f32 %v726_v42  ;;  %v665_v40 = vsub.f32 %v601_v36, %v2624_v50  ;;  %v650_v16 = vmul.f32 %v324_v11, %v324_v11  ;;  %v325_v58 = vmul.f32 0.05263158, %v2496_v55 }
 0x14e   : > { %v618_v8 = vmul.f32 0.05263158, %v582_v22  ;;  %v602_v43 = vmul.f32 0.05263158, %v534_v37  ;;  %v744_v45 = vadd.f32 1e-05, %v712_v56  ;;  %v832_v27 = vadd.f32 %v2659_v62, %v800_v34  ;;  %v1835_v28 = vpop.eup %1834 }
 0x14f   : > { %v728_v19 = vadd.f32 1e-05, %v696_v6  ;;  %v833_v46 = vadd.f32 %v2659_v62, %v801_v35  ;;  %v803_v55 = vmul.f32 %v1833_v39, %v2544_v31  ;;  %v802_v52 = vmul.f32 %v1831_v41, %v3174_v32  ;;  %v3179_v34 = vld [vmem:[#allocation6_spill] sm:$0xff] }
 0x150   : > { %913 = vrot.lane.b32.xlu1 %v831_v21, %s2023_s25  ;;  %911 = vrot.lane.b32.xlu0 %v830_v26, %s2023_s25  ;;  %v1837_v60 = vpop.eup %1836  ;;  %1846 = vrsqrt.f32 %v743_v61  ;;  %v713_v7 = vmax.f32 %v681_v51, 0.0  ;;  %v682_v20 = vsub.f32 %v618_v8, %v650_v16  ;;  %v697_v10 = vmax.f32 %v665_v40, 0.0 }
 0x151   : > { %v585_v33 = vpop.xlane.xlu1 %584  ;;  %v537_v50 = vpop.xlane.xlu0 %536  ;;  %1848 = vrsqrt.f32 %v727_v9  ;;  %v666_v0 = vsub.f32 %v602_v43, %v2616_v38  ;;  %v326_v44 = vmul.f32 0.05263158, %v3175_v30  ;;  %v651_v5 = vmul.f32 %v325_v58, %v325_v58  ;;  %v3177_v38 = vld [vmem:[#allocation4_spill] sm:$0xff]  ;;  %v3180_v9 = vld [vmem:[#allocation15_spill] sm:$0xff] }
 0x152   : > { %v619_v17 = vmul.f32 0.05263158, %v585_v33  ;;  %v603_v24 = vmul.f32 0.05263158, %v537_v50  ;;  %1850 = vrsqrt.f32 %v744_v45  ;;  %v804_v14 = vmul.f32 %v1835_v28, %v3176_v47  ;;  %v1839_v3 = vpop.eup %1838  ;;  %v3181_v45 = vld [vmem:[#allocation5_spill] sm:$0xff] }
 0x153   : > { %1852 = vrsqrt.f32 %v728_v19  ;;  %v835_v4 = vadd.f32 %v2659_v62, %v803_v55  ;;  %v834_v18 = vadd.f32 %v2659_v62, %v802_v52  ;;  %v788_v2 = vmul.f32 %v1837_v60, %v3177_v38  ;;  %v1841_v48 = vpop.eup %1840  ;;  %v3182_v55 = vld [vmem:[#allocation18_spill] sm:$0xff] }
 0x154   : > { %917 = vrot.lane.b32.xlu1 %v833_v46, %s2023_s25  ;;  %915 = vrot.lane.b32.xlu0 %v832_v27, %s2023_s25  ;;  %v745_v13 = vadd.f32 1e-05, %v713_v7  ;;  %v714_v12 = vmax.f32 %v682_v20, 0.0  ;;  %v683_v57 = vsub.f32 %v619_v17, %v651_v5  ;;  %v729_v29 = vadd.f32 1e-05, %v697_v10  ;;  %v3183_v7 = vld [vmem:[#allocation8_spill] sm:$0xff] }
 0x155   : > { %v588_v31 = vpop.xlane.xlu1 %587  ;;  %v540_v53 = vpop.xlane.xlu0 %539  ;;  %v698_v25 = vmax.f32 %v666_v0, 0.0  ;;  %v667_v54 = vsub.f32 %v603_v24, %v2635_v15  ;;  %v636_v59 = vmul.f32 %v2627_v23, %v2627_v23  ;;  %v652_v36 = vmul.f32 %v326_v44, %v326_v44  ;;  %v3184_v24 = vld [vmem:[#allocation17_spill] sm:$0xff]  ;;  %v3185_v44 = vld [vmem:[#allocation7_spill] sm:$0xff] }
 0x156   : > { %v620_v1 = vmul.f32 0.05263158, %v588_v31  ;;  %v604_v42 = vmul.f32 0.05263158, %v540_v53  ;;  %v836_v49 = vadd.f32 %v2659_v62, %v804_v14  ;;  %v820_v11 = vadd.f32 %v2659_v62, %v788_v2 }
 0x157   : > { %v805_v56 = vmul.f32 %v1839_v3, %v3178_v63  ;;  %v789_v41 = vmul.f32 %v1841_v48, %v3179_v34  ;;  %1854 = vrsqrt.f32 %v745_v13  ;;  %v746_v6 = vadd.f32 1e-05, %v714_v12  ;;  %v3188_v63 = vld [vmem:[#allocation12_spill] sm:$0xff] }
 0x158   : > { %921 = vrot.lane.b32.xlu1 %v835_v4, %s2023_s25  ;;  %919 = vrot.lane.b32.xlu0 %v834_v18, %s2023_s25  ;;  %v715_v15 = vmax.f32 %v683_v57, 0.0  ;;  %v684_v22 = vsub.f32 %v620_v1, %v652_v36  ;;  %1856 = vrsqrt.f32 %v729_v29  ;;  %v730_v23 = vadd.f32 1e-05, %v698_v25  ;;  %v3186_v18 = vld [vmem:[#allocation10_spill] sm:$0xff]  ;;  %v3187_v29 = vld [vmem:[#allocation9_spill] sm:$0xff] }
 0x159   : > { %v1843_v37 = vpop.eup %1842  ;;  %v699_v21 = vmax.f32 %v667_v54, 0.0  ;;  %v668_v26 = vsub.f32 %v604_v42, %v636_v59  ;;  %v837_v39 = vadd.f32 %v2659_v62, %v805_v56  ;;  %v821_v61 = vadd.f32 %v2659_v62, %v789_v41  ;;  %v451_v14 = vpop.xlane.xlu0 %450 }
 0x15a   : > { %v1845_v35 = vpop.eup %1844  ;;  %1858 = vrsqrt.f32 %v746_v6  ;;  %v747_v51 = vadd.f32 1e-05, %v715_v15  ;;  %v716_v8 = vmax.f32 %v684_v22, 0.0  ;;  %v806_v40 = vmul.f32 %v1843_v37, %v3180_v9  ;;  %v454_v48 = vpop.xlane.xlu1 %453  ;;  %v3189_v37 = vld [vmem:[#allocation11_spill] sm:$0xff] }
 0x15b   : > { %1860 = vrsqrt.f32 %v730_v23  ;;  %v731_v16 = vadd.f32 1e-05, %v699_v21  ;;  %v700_v58 = vmax.f32 %v668_v26, 0.0  ;;  %v790_v27 = vmul.f32 %v1845_v35, %v3181_v45 }
 0x15c   : > { %923 = vrot.lane.b32.xlu1 %v836_v49, %s2023_s25  ;;  %891 = vrot.lane.b32.xlu0 %v820_v11, %s2023_s25  ;;  %1862 = vrsqrt.f32 %v747_v51  ;;  %v748_v50 = vadd.f32 1e-05, %v716_v8  ;;  %v838_v46 = vadd.f32 %v2659_v62, %v806_v40 }
 0x15d   : > { %v1847_v43 = vpop.eup %1846  ;;  %1864 = vrsqrt.f32 %v731_v16  ;;  %v732_v52 = vadd.f32 1e-05, %v700_v58  ;;  %v822_v60 = vadd.f32 %v2659_v62, %v790_v27  ;;  %v457_v42 = vpop.xlane.xlu0 %456 }
 0x15e   : > { %v1849_v28 = vpop.eup %1848  ;;  %v807_v32 = vmul.f32 %v1847_v43, %v3182_v55  ;;  %1866 = vrsqrt.f32 %v748_v50  ;;  %v460_v41 = vpop.xlane.xlu1 %459 }
 0x15f   : > { %v1851_v19 = vpop.eup %1850  ;;  %v791_v20 = vmul.f32 %v1849_v28, %v3183_v7  ;;  %1868 = vrsqrt.f32 %v732_v52 }
 0x160   : > { %925 = vrot.lane.b32.xlu1 %v837_v39, %s2023_s25  ;;  %893 = vrot.lane.b32.xlu0 %v821_v61, %s2023_s25  ;;  %v1853_v33 = vpop.eup %1852  ;;  %v839_v17 = vadd.f32 %v2659_v62, %v807_v32  ;;  %v808_v30 = vmul.f32 %v1851_v19, %v3184_v24 }
 0x161   : > { %v823_v0 = vadd.f32 %v2659_v62, %v791_v20  ;;  %v792_v5 = vmul.f32 %v1853_v33, %v3185_v44 }
 0x162   : > { %v840_v53 = vadd.f32 %v2659_v62, %v808_v30 }
 0x163   : > { %v824_v4 = vadd.f32 %v2659_v62, %v792_v5 }
 0x164   : > { %927 = vrot.lane.b32.xlu1 %v838_v46, %s2023_s25  ;;  %895 = vrot.lane.b32.xlu0 %v822_v60, %s2023_s25  ;;  %v1855_v10 = vpop.eup %1854 }
 0x165   : > { %v1857_v47 = vpop.eup %1856  ;;  %v809_v31 = vmul.f32 %v1855_v10, %v451_v14  ;;  %v2024_v14 = vmov 1966171168  }
 0x166   : > { %v793_v38 = vmul.f32 %v1857_v47, %v3186_v18 }
 0x167   : > { %v1859_v3 = vpop.eup %1858  ;;  %v841_v12 = vadd.f32 %v2659_v62, %v809_v31  ;;  %v1043_v31 = vlaneseq }
 0x168   : > { %929 = vrot.lane.b32.xlu1 %v839_v17, %s2023_s25  ;;  %897 = vrot.lane.b32.xlu0 %v823_v0, %s2023_s25  ;;  %v1861_v2 = vpop.eup %1860  ;;  %v810_v57 = vmul.f32 %v1859_v3, %v454_v48  ;;  %v825_v1 = vadd.f32 %v2659_v62, %v793_v38  ;;  %v1041_v3 = vunpack.c.l.s4 %v2024_v14 }
 0x169   : > { %v1863_v13 = vpop.eup %1862  ;;  %v794_v25 = vmul.f32 %v1861_v2, %v3187_v29  ;;  %vm1057_vm1 = vcmp.lt.s32.totalorder %v1043_v31, 256 }
 0x16a   : > { %v1865_v54 = vpop.eup %1864  ;;  %v842_v36 = vadd.f32 %v2659_v62, %v810_v57  ;;  %v811_v49 = vmul.f32 %v1863_v13, %v457_v42 }
 0x16b   : > { %v1867_v59 = vpop.eup %1866  ;;  %v826_v11 = vadd.f32 %v2659_v62, %v794_v25  ;;  %v795_v56 = vmul.f32 %v1865_v54, %v3188_v63 }
 0x16c   : > { %931 = vrot.lane.b32.xlu1 %v840_v53, %s2023_s25  ;;  %899 = vrot.lane.b32.xlu0 %v824_v4, %s2023_s25  ;;  %v1869_v34 = vpop.eup %1868  ;;  %v843_v6 = vadd.f32 %v2659_v62, %v811_v49  ;;  %v812_v15 = vmul.f32 %v1867_v59, %v460_v41  ;;  %v1042_v53 = vunpack.c.0.s8 %v1041_v3  ;;  %v1044_v4 = vshrl.u32 %v1043_v31, 7 }
 0x16d   : > { %v827_v22 = vadd.f32 %v2659_v62, %v795_v56  ;;  %v796_v23 = vmul.f32 %v1869_v34, %v3189_v37 }
 0x16e   : > { %v844_v21 = vadd.f32 %v2659_v62, %v812_v15  ;;  %v1045_v38 = vsub.s32 %v1042_v53, %v1044_v4 }
 0x16f   : > { %v828_v26 = vadd.f32 %v2659_v62, %v796_v23 }
 0x170   : > { %901 = vrot.lane.b32.xlu0 %v825_v1, %s2023_s25  ;;  %933 = vrot.lane.b32.xlu1 %v841_v12, %s2023_s25 }
 0x174   : > { %903 = vrot.lane.b32.xlu0 %v826_v11, %s2023_s25  ;;  %935 = vrot.lane.b32.xlu1 %v842_v36, %s2023_s25 }
 0x178   : > { %905 = vrot.lane.b32.xlu0 %v827_v22, %s2023_s25  ;;  %937 = vrot.lane.b32.xlu1 %v843_v6, %s2023_s25 }
 0x17c   : > { %907 = vrot.lane.b32.xlu0 %v828_v26, %s2023_s25  ;;  %939 = vrot.lane.b32.xlu1 %v844_v21, %s2023_s25 }
 0x1a7   : > { %v878_v35 = vpop.permute.xlu0 %877 }
 0x1a8   : > { %973 = vxpose.xlu0.b32.start [1/16] (narrow) %v878_v35, 8 }
 0x1ab   : > { %v880_v39 = vpop.permute.xlu1 %879 }
 0x1ac   : > { %974 = vxpose.xlu0.b32.cont [2/16] (narrow) %v880_v39, 8 }
 0x1af   : > { %v882_v61 = vpop.permute.xlu1 %881 }
 0x1b0   : > { %975 = vxpose.xlu0.b32.cont [3/16] (narrow) %v882_v61, 8 }
 0x1b3   : > { %v884_v51 = vpop.permute.xlu1 %883 }
 0x1b4   : > { %976 = vxpose.xlu0.b32.cont [4/16] (narrow) %v884_v51, 8 }
 0x1b6   : > { %v886_v8 = vpop.permute.xlu0 %885 }
 0x1b8   : > { %977 = vxpose.xlu0.b32.cont [5/16] (narrow) %v886_v8, 8 }
 0x1ba   : > { %v888_v9 = vpop.permute.xlu1 %887 }
 0x1bc   : > { %978 = vxpose.xlu0.b32.cont [6/16] (narrow) %v888_v9, 8 }
 0x1be   : > { %v910_v40 = vpop.permute.xlu1 %909  ;;  %v890_v43 = vpop.permute.xlu0 %889 }
 0x1bf   : > { %1005 = vxpose.xlu1.b32.start [1/16] (narrow) %v910_v40, 8 }
 0x1c0   : > { %979 = vxpose.xlu0.b32.cont [7/16] (narrow) %v890_v43, 8 }
 0x1c2   : > { %v914_v62 = vpop.permute.xlu1 %913  ;;  %v912_v16 = vpop.permute.xlu0 %911 }
 0x1c3   : > { %1006 = vxpose.xlu1.b32.cont [2/16] (narrow) %v912_v16, 8 }
 0x1c6   : > { %v918_v58 = vpop.permute.xlu1 %917  ;;  %v916_v45 = vpop.permute.xlu0 %915 }
 0x1c7   : > { %1007 = vxpose.xlu1.b32.cont [3/16] (narrow) %v914_v62, 8 }
 0x1ca   : > { %v922_v27 = vpop.permute.xlu1 %921  ;;  %v920_v28 = vpop.permute.xlu0 %919 }
 0x1cb   : > { %1008 = vxpose.xlu1.b32.cont [4/16] (narrow) %v916_v45, 8 }
 0x1ce   : > { %v924_v19 = vpop.permute.xlu1 %923  ;;  %v892_v33 = vpop.permute.xlu0 %891 }
 0x1cf   : > { %1009 = vxpose.xlu1.b32.cont [5/16] (narrow) %v918_v58, 8  ;;  %980 = vxpose.xlu0.b32.cont [8/16] (narrow) %v892_v33, 8 }
 0x1d2   : > { %v926_v50 = vpop.permute.xlu1 %925  ;;  %v894_v46 = vpop.permute.xlu0 %893 }
 0x1d3   : > { %1010 = vxpose.xlu1.b32.cont [6/16] (narrow) %v920_v28, 8  ;;  %981 = vxpose.xlu0.b32.cont [9/16] (narrow) %v894_v46, 8 }
 0x1d6   : > { %v928_v55 = vpop.permute.xlu1 %927  ;;  %v896_v32 = vpop.permute.xlu0 %895 }
 0x1d7   : > { %1011 = vxpose.xlu1.b32.cont [7/16] (narrow) %v922_v27, 8  ;;  %982 = vxpose.xlu0.b32.cont [10/16] (narrow) %v896_v32, 8 }
 0x1da   : > { %v898_v52 = vpop.permute.xlu0 %897  ;;  %v930_v60 = vpop.permute.xlu1 %929 }
 0x1db   : > { %1012 = vxpose.xlu1.b32.cont [8/16] (narrow) %v924_v19, 8  ;;  %983 = vxpose.xlu0.b32.cont [11/16] (narrow) %v898_v52, 8 }
 0x1de   : > { %v900_v7 = vpop.permute.xlu0 %899  ;;  %v932_v20 = vpop.permute.xlu1 %931 }
 0x1df   : > { %1013 = vxpose.xlu1.b32.cont [9/16] (narrow) %v926_v50, 8  ;;  %984 = vxpose.xlu0.b32.cont [12/16] (narrow) %v900_v7, 8 }
 0x1e2   : > { %v902_v17 = vpop.permute.xlu0 %901  ;;  %v934_v0 = vpop.permute.xlu1 %933 }
 0x1e3   : > { %1014 = vxpose.xlu1.b32.cont [10/16] (narrow) %v928_v55, 8  ;;  %985 = vxpose.xlu0.b32.cont [13/16] (narrow) %v902_v17, 8 }
 0x1e6   : > { %v904_v10 = vpop.permute.xlu0 %903  ;;  %v936_v30 = vpop.permute.xlu1 %935 }
 0x1e7   : > { %1015 = vxpose.xlu1.b32.cont [11/16] (narrow) %v930_v60, 8  ;;  %986 = vxpose.xlu0.b32.cont [14/16] (narrow) %v904_v10, 8 }
 0x1ea   : > { %v906_v24 = vpop.permute.xlu0 %905  ;;  %v938_v5 = vpop.permute.xlu1 %937 }
 0x1eb   : > { %1016 = vxpose.xlu1.b32.cont [12/16] (narrow) %v932_v20, 8  ;;  %987 = vxpose.xlu0.b32.cont [15/16] (narrow) %v906_v24, 8 }
 0x1ee   : > { %v908_v44 = vpop.permute.xlu0 %907  ;;  %v940_v47 = vpop.permute.xlu1 %939 }
 0x1ef   : > { %1017 = vxpose.xlu1.b32.cont [13/16] (narrow) %v934_v0, 8  ;;  %988 = vxpose.xlu0.b32.end [16/16] (narrow) %v908_v44, 8 }
 0x1f3   : > { %1018 = vxpose.xlu1.b32.cont [14/16] (narrow) %v936_v30, 8 }
 0x1f7   : > { %1019 = vxpose.xlu1.b32.cont [15/16] (narrow) %v938_v5, 8 }
 0x1fb   : > { %1020 = vxpose.xlu1.b32.end [16/16] (narrow) %v940_v47, 8 }
 0x22f   : > { %v989_v18 = vpop.trf.xlu0 }
 0x23b   : > { %v1021_v2 = vpop.trf.xlu1 }
 0x23c   : > { %v1039_v48 = vcombine.low %v989_v18, %v1021_v2 }
 0x23e   : > { %v1046_v13 = vrot.slane %v1039_v48, %v1045_v38  ;;  %1066 = sbr.rel (!%p2067_p4) target bundleno = 725 (0x2d5), region = 32 }
 0x240   : > { %v1053_v12 = vrot.slane %v1046_v13, %v1045_v38 }
 0x242   : > { %1059 = vst.msk [vmem:[%s2729_s30] sm:$0x3] %vm1057_vm1, %v1053_v12 }
 0x243   : > { %s3206_s4 = smov (!%p1069_p8, %s1068_s4), 2 }
 0x244   : > { %s1619_s8 = sshll.u32 %s3206_s4, 4 }
 0x245   : > { %p1621_p9 = scmp.eq.s32.totalorder %s1619_s8, 0 }
 0x246   : > { %p1077_p10 = scmp.lt.u32.totalorder (!%p1621_p9), %s3206_s4, 8 }
 0x247   : > { %1076 = sbr.rel (%p1621_p9) target bundleno = 725 (0x2d5), region = 36 }
 0x24c   : > { %1080 = sbr.rel (%p1077_p10) target bundleno = 716 (0x2cc), region = 40  ;;  %s2745_s9 = sand.u32 (!%p1077_p10), 7, %s3206_s4  }
 0x24d   : > { %p1097_p11 = scmp.eq.s32.totalorder (!%p1077_p10), %s2745_s9, 0  ;;  %p1622_p12 = scmp.ne.s32.totalorder (!%p1077_p10), %s2745_s9, 0 }
 0x251   : > { %1100 = sbr.rel (%p1622_p12) target bundleno = 652 (0x28c), region = 55  ;;  %s1101_s11 = sshrl.u32 (!%p1622_p12), %s3206_s4, 3 }
 0x252   : > { %s2752_s12 = sshrl.u32 (!%p1622_p12), %s1101_s11, 6 }
 0x253   : > { %p1623_p13 = scmp.le.s32.totalorder (!%p1622_p12), %s2752_s12, 0 }
 0x256   : > { %1537 = sbr.rel (%p1623_p13) target bundleno = 636 (0x27c), region = 136  ;;  %s3190_s14 = smov (!%p1623_p13), %s2738_s7 }
 0x257   : > { %s3191_s15 = smov (!%p1623_p13), %s2729_s30  ;;  %s2761_s17 = smov (!%p1623_p13), 0  }
 0x258   : > { %s2763_s18 = smov (!%p1623_p13), 0  }
 0x25b LB: >> { %v1114_v57 = vld [vmem:[%s1965_s15] sm:$0xff]  ;;  %v1116_v1 = vld [vmem:[%s1965_s15 + $0x8] sm:$0xff]  ;;  %v1118_v29 = vld [vmem:[%s1965_s15 + $0x10] sm:$0xff]  ;;  %s1242_s19 = sadd.s32 1, %s1969_s17  ;;  %s1108_s18 = sadd.s32 1, %s1973_s18   ;;  %s1973_s18 = sphi %s2763_s18, %s1108_s18   ;;  %s1969_s17 = sphi %s2761_s17, %s3194_s17   ;;  %s1965_s15 = sphi %s3191_s15, %s3193_s15   ;;  %s1961_s14 = sphi %s3190_s14, %s3192_s14  }
 0x25c   : >> { %1115 = vst [vmem:[%s1961_s14] sm:$0xff] %v1114_v57  ;;  %1117 = vst [vmem:[%s1961_s14 + $0x8] sm:$0xff] %v1116_v1  ;;  %v1120_v25 = vld [vmem:[%s1965_s15 + $0x18] sm:$0xff]  ;;  %v1122_v54 = vld [vmem:[%s1965_s15 + $0x20] sm:$0xff]  ;;  %p1243_p0 = scmp.ge.s32.totalorder %s1242_s19, %s2752_s12  ;;  %p1107_p1 = scmp.ge.s32.totalorder %s1108_s18, %s2752_s12 }
 0x25d   : >> { %1119 = vst [vmem:[%s1961_s14 + $0x10] sm:$0xff] %v1118_v29  ;;  %v1124_v42 = vld [vmem:[%s1965_s15 + $0x28] sm:$0xff]  ;;  %1121 = vst [vmem:[%s1961_s14 + $0x18] sm:$0xff] %v1120_v25  ;;  %v1126_v59 = vld [vmem:[%s1965_s15 + $0x30] sm:$0xff] }
 0x25e   : >> { %1123 = vst [vmem:[%s1961_s14 + $0x20] sm:$0xff] %v1122_v54  ;;  %1125 = vst [vmem:[%s1961_s14 + $0x28] sm:$0xff] %v1124_v42  ;;  %v1128_v36 = vld [vmem:[%s1965_s15 + $0x38] sm:$0xff]  ;;  %v1130_v49 = vld [vmem:[%s1965_s15 + $0x40] sm:$0xff]  ;;  %s3208_s19 = smov (%p1243_p0, %s1242_s19), 0 }
 0x25f   : >> { %1127 = vst [vmem:[%s1961_s14 + $0x30] sm:$0xff] %v1126_v59  ;;  %1129 = vst [vmem:[%s1961_s14 + $0x38] sm:$0xff] %v1128_v36  ;;  %v1132_v11 = vld [vmem:[%s1965_s15 + $0x48] sm:$0xff]  ;;  %v1134_v63 = vld [vmem:[%s1965_s15 + $0x50] sm:$0xff]  ;;  %s1624_s20 = sshll.u32 %s3208_s19, 9  ;;  %s3194_s17 = smov %s3208_s19 }
 0x260   : >> { %1131 = vst [vmem:[%s1961_s14 + $0x40] sm:$0xff] %v1130_v49  ;;  %v1136_v56 = vld [vmem:[%s1965_s15 + $0x58] sm:$0xff]  ;;  %1133 = vst [vmem:[%s1961_s14 + $0x48] sm:$0xff] %v1132_v11  ;;  %v1138_v34 = vld [vmem:[%s1965_s15 + $0x60] sm:$0xff]  ;;  %s2819_s21 = scalar_lea.vmem %s2729_s30, %s1624_s20 [#allocation2]   ;;  %s2822_s22 = scalar_lea.vmem %s2738_s7, %s1624_s20  }
 0x261   : >> { %1135 = vst [vmem:[%s1961_s14 + $0x50] sm:$0xff] %v1134_v63  ;;  %1137 = vst [vmem:[%s1961_s14 + $0x58] sm:$0xff] %v1136_v56  ;;  %v1140_v41 = vld [vmem:[%s1965_s15 + $0x68] sm:$0xff]  ;;  %v1142_v6 = vld [vmem:[%s1965_s15 + $0x70] sm:$0xff] }
 0x262   : >> { %1139 = vst [vmem:[%s1961_s14 + $0x60] sm:$0xff] %v1138_v34  ;;  %1141 = vst [vmem:[%s1961_s14 + $0x68] sm:$0xff] %v1140_v41  ;;  %v1144_v15 = vld [vmem:[%s1965_s15 + $0x78] sm:$0xff]  ;;  %v1146_v22 = vld [vmem:[%s1965_s15 + $0x80] sm:$0xff] }
 0x263   : >> { %1143 = vst [vmem:[%s1961_s14 + $0x70] sm:$0xff] %v1142_v6  ;;  %v1148_v37 = vld [vmem:[%s1965_s15 + $0x88] sm:$0xff]  ;;  %1145 = vst [vmem:[%s1961_s14 + $0x78] sm:$0xff] %v1144_v15  ;;  %v1150_v23 = vld [vmem:[%s1965_s15 + $0x90] sm:$0xff] }
 0x264   : >> { %1147 = vst [vmem:[%s1961_s14 + $0x80] sm:$0xff] %v1146_v22  ;;  %1149 = vst [vmem:[%s1961_s14 + $0x88] sm:$0xff] %v1148_v37  ;;  %v1152_v21 = vld [vmem:[%s1965_s15 + $0x98] sm:$0xff]  ;;  %v1154_v26 = vld [vmem:[%s1965_s15 + $0xa0] sm:$0xff] }
 0x265   : >> { %1151 = vst [vmem:[%s1961_s14 + $0x90] sm:$0xff] %v1150_v23  ;;  %1153 = vst [vmem:[%s1961_s14 + $0x98] sm:$0xff] %v1152_v21  ;;  %v1156_v35 = vld [vmem:[%s1965_s15 + $0xa8] sm:$0xff]  ;;  %v1158_v39 = vld [vmem:[%s1965_s15 + $0xb0] sm:$0xff] }
 0x266   : >> { %1155 = vst [vmem:[%s1961_s14 + $0xa0] sm:$0xff] %v1154_v26  ;;  %v1160_v61 = vld [vmem:[%s1965_s15 + $0xb8] sm:$0xff]  ;;  %1157 = vst [vmem:[%s1961_s14 + $0xa8] sm:$0xff] %v1156_v35  ;;  %v1162_v51 = vld [vmem:[%s1965_s15 + $0xc0] sm:$0xff] }
 0x267   : >> { %1159 = vst [vmem:[%s1961_s14 + $0xb0] sm:$0xff] %v1158_v39  ;;  %1161 = vst [vmem:[%s1961_s14 + $0xb8] sm:$0xff] %v1160_v61  ;;  %v1164_v8 = vld [vmem:[%s1965_s15 + $0xc8] sm:$0xff]  ;;  %v1166_v9 = vld [vmem:[%s1965_s15 + $0xd0] sm:$0xff] }
 0x268   : >> { %1163 = vst [vmem:[%s1961_s14 + $0xc0] sm:$0xff] %v1162_v51  ;;  %1165 = vst [vmem:[%s1961_s14 + $0xc8] sm:$0xff] %v1164_v8  ;;  %v1168_v40 = vld [vmem:[%s1965_s15 + $0xd8] sm:$0xff]  ;;  %v1170_v43 = vld [vmem:[%s1965_s15 + $0xe0] sm:$0xff] }
 0x269   : >> { %1167 = vst [vmem:[%s1961_s14 + $0xd0] sm:$0xff] %v1166_v9  ;;  %v1172_v62 = vld [vmem:[%s1965_s15 + $0xe8] sm:$0xff]  ;;  %1169 = vst [vmem:[%s1961_s14 + $0xd8] sm:$0xff] %v1168_v40  ;;  %v1174_v16 = vld [vmem:[%s1965_s15 + $0xf0] sm:$0xff] }
 0x26a   : >> { %1171 = vst [vmem:[%s1961_s14 + $0xe0] sm:$0xff] %v1170_v43  ;;  %1173 = vst [vmem:[%s1961_s14 + $0xe8] sm:$0xff] %v1172_v62  ;;  %v1176_v58 = vld [vmem:[%s1965_s15 + $0xf8] sm:$0xff]  ;;  %v1178_v45 = vld [vmem:[%s1965_s15 + $0x100] sm:$0xff] }
 0x26b   : >> { %1175 = vst [vmem:[%s1961_s14 + $0xf0] sm:$0xff] %v1174_v16  ;;  %1177 = vst [vmem:[%s1961_s14 + $0xf8] sm:$0xff] %v1176_v58  ;;  %v1180_v27 = vld [vmem:[%s1965_s15 + $0x108] sm:$0xff]  ;;  %v1182_v28 = vld [vmem:[%s1965_s15 + $0x110] sm:$0xff] }
 0x26c   : >> { %1179 = vst [vmem:[%s1961_s14 + $0x100] sm:$0xff] %v1178_v45  ;;  %v1184_v19 = vld [vmem:[%s1965_s15 + $0x118] sm:$0xff]  ;;  %1181 = vst [vmem:[%s1961_s14 + $0x108] sm:$0xff] %v1180_v27  ;;  %v1186_v33 = vld [vmem:[%s1965_s15 + $0x120] sm:$0xff] }
 0x26d   : >> { %1183 = vst [vmem:[%s1961_s14 + $0x110] sm:$0xff] %v1182_v28  ;;  %1185 = vst [vmem:[%s1961_s14 + $0x118] sm:$0xff] %v1184_v19  ;;  %v1188_v50 = vld [vmem:[%s1965_s15 + $0x128] sm:$0xff]  ;;  %v1190_v46 = vld [vmem:[%s1965_s15 + $0x130] sm:$0xff] }
 0x26e   : >> { %1187 = vst [vmem:[%s1961_s14 + $0x120] sm:$0xff] %v1186_v33  ;;  %1189 = vst [vmem:[%s1961_s14 + $0x128] sm:$0xff] %v1188_v50  ;;  %v1192_v55 = vld [vmem:[%s1965_s15 + $0x138] sm:$0xff]  ;;  %v1194_v32 = vld [vmem:[%s1965_s15 + $0x140] sm:$0xff] }
 0x26f   : >> { %1191 = vst [vmem:[%s1961_s14 + $0x130] sm:$0xff] %v1190_v46  ;;  %v1196_v52 = vld [vmem:[%s1965_s15 + $0x148] sm:$0xff]  ;;  %1193 = vst [vmem:[%s1961_s14 + $0x138] sm:$0xff] %v1192_v55  ;;  %v1198_v60 = vld [vmem:[%s1965_s15 + $0x150] sm:$0xff] }
 0x270   : >> { %1195 = vst [vmem:[%s1961_s14 + $0x140] sm:$0xff] %v1194_v32  ;;  %1197 = vst [vmem:[%s1961_s14 + $0x148] sm:$0xff] %v1196_v52  ;;  %v1200_v7 = vld [vmem:[%s1965_s15 + $0x158] sm:$0xff]  ;;  %v1202_v20 = vld [vmem:[%s1965_s15 + $0x160] sm:$0xff] }
 0x271   : >> { %1199 = vst [vmem:[%s1961_s14 + $0x150] sm:$0xff] %v1198_v60  ;;  %1201 = vst [vmem:[%s1961_s14 + $0x158] sm:$0xff] %v1200_v7  ;;  %v1204_v17 = vld [vmem:[%s1965_s15 + $0x168] sm:$0xff]  ;;  %v1206_v10 = vld [vmem:[%s1965_s15 + $0x170] sm:$0xff] }
 0x272   : >> { %1203 = vst [vmem:[%s1961_s14 + $0x160] sm:$0xff] %v1202_v20  ;;  %v1208_v0 = vld [vmem:[%s1965_s15 + $0x178] sm:$0xff]  ;;  %1205 = vst [vmem:[%s1961_s14 + $0x168] sm:$0xff] %v1204_v17  ;;  %v1210_v24 = vld [vmem:[%s1965_s15 + $0x180] sm:$0xff] }
 0x273   : >> { %1207 = vst [vmem:[%s1961_s14 + $0x170] sm:$0xff] %v1206_v10  ;;  %1209 = vst [vmem:[%s1961_s14 + $0x178] sm:$0xff] %v1208_v0  ;;  %v1212_v30 = vld [vmem:[%s1965_s15 + $0x188] sm:$0xff]  ;;  %v1214_v44 = vld [vmem:[%s1965_s15 + $0x190] sm:$0xff] }
 0x274   : >> { %1211 = vst [vmem:[%s1961_s14 + $0x180] sm:$0xff] %v1210_v24  ;;  %1213 = vst [vmem:[%s1961_s14 + $0x188] sm:$0xff] %v1212_v30  ;;  %v1216_v5 = vld [vmem:[%s1965_s15 + $0x198] sm:$0xff]  ;;  %v1218_v47 = vld [vmem:[%s1965_s15 + $0x1a0] sm:$0xff] }
 0x275   : >> { %1215 = vst [vmem:[%s1961_s14 + $0x190] sm:$0xff] %v1214_v44  ;;  %v1220_v14 = vld [vmem:[%s1965_s15 + $0x1a8] sm:$0xff]  ;;  %1217 = vst [vmem:[%s1961_s14 + $0x198] sm:$0xff] %v1216_v5  ;;  %v1222_v3 = vld [vmem:[%s1965_s15 + $0x1b0] sm:$0xff] }
 0x276   : >> { %1219 = vst [vmem:[%s1961_s14 + $0x1a0] sm:$0xff] %v1218_v47  ;;  %1221 = vst [vmem:[%s1961_s14 + $0x1a8] sm:$0xff] %v1220_v14  ;;  %v1224_v31 = vld [vmem:[%s1965_s15 + $0x1b8] sm:$0xff]  ;;  %v1226_v53 = vld [vmem:[%s1965_s15 + $0x1c0] sm:$0xff] }
 0x277   : >> { %1223 = vst [vmem:[%s1961_s14 + $0x1b0] sm:$0xff] %v1222_v3  ;;  %1225 = vst [vmem:[%s1961_s14 + $0x1b8] sm:$0xff] %v1224_v31  ;;  %v1228_v4 = vld [vmem:[%s1965_s15 + $0x1c8] sm:$0xff]  ;;  %v1230_v18 = vld [vmem:[%s1965_s15 + $0x1d0] sm:$0xff]  ;;  %1110 = sbr.rel (!%p1107_p1) target bundleno = 603 (0x25b), region = 142 }
 0x278   : >> { %1227 = vst [vmem:[%s1961_s14 + $0x1c0] sm:$0xff] %v1226_v53  ;;  %v1232_v38 = vld [vmem:[%s1965_s15 + $0x1d8] sm:$0xff]  ;;  %1229 = vst [vmem:[%s1961_s14 + $0x1c8] sm:$0xff] %v1228_v4  ;;  %v1234_v2 = vld [vmem:[%s1965_s15 + $0x1e0] sm:$0xff] }
 0x279   : >> { %1231 = vst [vmem:[%s1961_s14 + $0x1d0] sm:$0xff] %v1230_v18  ;;  %1233 = vst [vmem:[%s1961_s14 + $0x1d8] sm:$0xff] %v1232_v38  ;;  %v1236_v48 = vld [vmem:[%s1965_s15 + $0x1e8] sm:$0xff]  ;;  %v1238_v13 = vld [vmem:[%s1965_s15 + $0x1f0] sm:$0xff] }
 0x27a   : >> { %1235 = vst [vmem:[%s1961_s14 + $0x1e0] sm:$0xff] %v1234_v2  ;;  %1237 = vst [vmem:[%s1961_s14 + $0x1e8] sm:$0xff] %v1236_v48  ;;  %v1240_v12 = vld [vmem:[%s1965_s15 + $0x1f8] sm:$0xff]  ;;  %s3193_s15 = smov %s2819_s21 }
 0x27b   : >> { %1239 = vst [vmem:[%s1961_s14 + $0x1f0] sm:$0xff] %v1238_v13  ;;  %1241 = vst [vmem:[%s1961_s14 + $0x1f8] sm:$0xff] %v1240_v12  ;;  %s3192_s14 = smov %s2822_s22 }
 0x27c PF: > { %s2928_s23 = sand.u32 63, %s1101_s11   ;;  %s1646_s24 = sshll.u32 %s2752_s12, 13 }
 0x27d   : > { %s1253_s25 = sshra.s32 %s1646_s24, 4  ;;  %p1629_p2 = scmp.le.s32.totalorder %s2928_s23, 0 }
 0x27e   : > { %s1254_s26 = scalar_lea.vmem %s2729_s30, %s1253_s25 [#allocation2]   ;;  %s1257_s27 = scalar_lea.vmem %s2738_s7, %s1253_s25  }
 0x27f   : > { %1551 = sbr.rel (%p1629_p2) target bundleno = 652 (0x28c), region = 147  ;;  %s1975_s28 = smov (!%p1629_p2), %s1257_s27  }
 0x280   : > { %s1979_s29 = smov (!%p1629_p2), %s1254_s26   ;;  %s1983_s3 = smov (!%p1629_p2), 0  }
 0x281   : > { %s1987_s5 = smov (!%p1629_p2), 0  }
 0x284 LB: >> { %v1269_v57 = vld [vmem:[%s1981_s29] sm:$0xff]  ;;  %s1271_s6 = sadd.s32 1, %s1985_s3  ;;  %s1263_s5 = sadd.s32 1, %s1989_s5   ;;  %s1989_s5 = sphi %s1987_s5, %s1263_s5   ;;  %s1985_s3 = sphi %s1983_s3, %s1984_s3   ;;  %s1981_s29 = sphi %s1979_s29, %s1276_s29   ;;  %s1977_s28 = sphi %s1975_s28, %s1277_s28  }
 0x285   : >> { %1270 = vst [vmem:[%s1977_s28] sm:$0xff] %v1269_v57  ;;  %p1272_p3 = scmp.ge.s32.totalorder %s1271_s6, %s2928_s23  ;;  %p1262_p4 = scmp.ge.s32.totalorder %s1263_s5, %s2928_s23 }
 0x287   : >> { %s3210_s6 = smov (%p1272_p3, %s1271_s6), 0  ;;  %1265 = sbr.rel (!%p1262_p4) target bundleno = 644 (0x284), region = 153 }
 0x288   : >> { %s1630_s8 = sshll.u32 %s3210_s6, 3  ;;  %s1984_s3 = smov %s3210_s6  }
 0x289   : >> { %s1276_s29 = scalar_lea.vmem %s1254_s26, %s1630_s8 [#allocation2]   ;;  %s1277_s28 = scalar_lea.vmem %s1257_s27, %s1630_s8  }
 0x28c PF: > { %1280 = sbr.rel (%p1097_p11) target bundleno = 716 (0x2cc), region = 73  ;;  %s2940_s11 = ssub.s32 (!%p1097_p11), %s3206_s4, %s2745_s9 }
 0x28d   : > { %s1286_s12 = sshrl.u32 (!%p1097_p11), %s3206_s4, 3  ;;  %s1283_s14 = scalar_lea.vmem (!%p1097_p11), %s2729_s30, %s2940_s11 [#allocation2] }
 0x28e   : > { %s1285_s15 = scalar_lea.vmem (!%p1097_p11), %s2738_s7, %s2940_s11  ;;  %s2949_s17 = sshrl.u32 (!%p1097_p11), %s1286_s12, 6 }
 0x28f   : > { %p1632_p5 = scmp.le.s32.totalorder (!%p1097_p11), %s2949_s17, 0 }
 0x291   : > { %1565 = sbr.rel (%p1632_p5) target bundleno = 695 (0x2b7), region = 158  ;;  %s3195_s18 = smov (!%p1632_p5), %s2738_s7 }
 0x292   : > { %s3196_s19 = smov (!%p1632_p5), %s2729_s30  ;;  %s2958_s20 = smov (!%p1632_p5), 0  }
 0x293   : > { %s2960_s21 = smov (!%p1632_p5), 0  }
 0x296 LB: >> { %v1299_v1 = vld [vmem:[%s1997_s19] sm:$0xff]  ;;  %v1301_v29 = vld [vmem:[%s1997_s19 + $0x8] sm:$0xff]  ;;  %v1303_v25 = vld [vmem:[%s1997_s19 + $0x10] sm:$0xff]  ;;  %s1427_s22 = sadd.s32 1, %s2001_s20  ;;  %s1293_s21 = sadd.s32 1, %s2005_s21   ;;  %s2005_s21 = sphi %s2960_s21, %s1293_s21   ;;  %s2001_s20 = sphi %s2958_s20, %s3199_s20   ;;  %s1997_s19 = sphi %s3196_s19, %s3198_s19   ;;  %s1993_s18 = sphi %s3195_s18, %s3197_s18  }
 0x297   : >> { %1300 = vst [vmem:[%s1993_s18] sm:$0xff] %v1299_v1  ;;  %1302 = vst [vmem:[%s1993_s18 + $0x8] sm:$0xff] %v1301_v29  ;;  %v1305_v54 = vld [vmem:[%s1997_s19 + $0x18] sm:$0xff]  ;;  %v1307_v42 = vld [vmem:[%s1997_s19 + $0x20] sm:$0xff]  ;;  %p1428_p6 = scmp.ge.s32.totalorder %s1427_s22, %s2949_s17  ;;  %p1292_p7 = scmp.ge.s32.totalorder %s1293_s21, %s2949_s17 }
 0x298   : >> { %1304 = vst [vmem:[%s1993_s18 + $0x10] sm:$0xff] %v1303_v25  ;;  %v1309_v59 = vld [vmem:[%s1997_s19 + $0x28] sm:$0xff]  ;;  %1306 = vst [vmem:[%s1993_s18 + $0x18] sm:$0xff] %v1305_v54  ;;  %v1311_v36 = vld [vmem:[%s1997_s19 + $0x30] sm:$0xff] }
 0x299   : >> { %1308 = vst [vmem:[%s1993_s18 + $0x20] sm:$0xff] %v1307_v42  ;;  %1310 = vst [vmem:[%s1993_s18 + $0x28] sm:$0xff] %v1309_v59  ;;  %v1313_v49 = vld [vmem:[%s1997_s19 + $0x38] sm:$0xff]  ;;  %v1315_v11 = vld [vmem:[%s1997_s19 + $0x40] sm:$0xff]  ;;  %s3212_s22 = smov (%p1428_p6, %s1427_s22), 0 }
 0x29a   : >> { %1312 = vst [vmem:[%s1993_s18 + $0x30] sm:$0xff] %v1311_v36  ;;  %1314 = vst [vmem:[%s1993_s18 + $0x38] sm:$0xff] %v1313_v49  ;;  %v1317_v63 = vld [vmem:[%s1997_s19 + $0x48] sm:$0xff]  ;;  %v1319_v56 = vld [vmem:[%s1997_s19 + $0x50] sm:$0xff]  ;;  %s1633_s23 = sshll.u32 %s3212_s22, 9  ;;  %s3199_s20 = smov %s3212_s22 }
 0x29b   : >> { %1316 = vst [vmem:[%s1993_s18 + $0x40] sm:$0xff] %v1315_v11  ;;  %v1321_v34 = vld [vmem:[%s1997_s19 + $0x58] sm:$0xff]  ;;  %1318 = vst [vmem:[%s1993_s18 + $0x48] sm:$0xff] %v1317_v63  ;;  %v1323_v41 = vld [vmem:[%s1997_s19 + $0x60] sm:$0xff]  ;;  %s3016_s24 = scalar_lea.vmem %s2729_s30, %s1633_s23 [#allocation2]   ;;  %s3019_s25 = scalar_lea.vmem %s2738_s7, %s1633_s23  }
 0x29c   : >> { %1320 = vst [vmem:[%s1993_s18 + $0x50] sm:$0xff] %v1319_v56  ;;  %1322 = vst [vmem:[%s1993_s18 + $0x58] sm:$0xff] %v1321_v34  ;;  %v1325_v6 = vld [vmem:[%s1997_s19 + $0x68] sm:$0xff]  ;;  %v1327_v15 = vld [vmem:[%s1997_s19 + $0x70] sm:$0xff] }
 0x29d   : >> { %1324 = vst [vmem:[%s1993_s18 + $0x60] sm:$0xff] %v1323_v41  ;;  %1326 = vst [vmem:[%s1993_s18 + $0x68] sm:$0xff] %v1325_v6  ;;  %v1329_v22 = vld [vmem:[%s1997_s19 + $0x78] sm:$0xff]  ;;  %v1331_v37 = vld [vmem:[%s1997_s19 + $0x80] sm:$0xff] }
 0x29e   : >> { %1328 = vst [vmem:[%s1993_s18 + $0x70] sm:$0xff] %v1327_v15  ;;  %v1333_v23 = vld [vmem:[%s1997_s19 + $0x88] sm:$0xff]  ;;  %1330 = vst [vmem:[%s1993_s18 + $0x78] sm:$0xff] %v1329_v22  ;;  %v1335_v21 = vld [vmem:[%s1997_s19 + $0x90] sm:$0xff] }
 0x29f   : >> { %1332 = vst [vmem:[%s1993_s18 + $0x80] sm:$0xff] %v1331_v37  ;;  %1334 = vst [vmem:[%s1993_s18 + $0x88] sm:$0xff] %v1333_v23  ;;  %v1337_v26 = vld [vmem:[%s1997_s19 + $0x98] sm:$0xff]  ;;  %v1339_v35 = vld [vmem:[%s1997_s19 + $0xa0] sm:$0xff] }
 0x2a0   : >> { %1336 = vst [vmem:[%s1993_s18 + $0x90] sm:$0xff] %v1335_v21  ;;  %1338 = vst [vmem:[%s1993_s18 + $0x98] sm:$0xff] %v1337_v26  ;;  %v1341_v39 = vld [vmem:[%s1997_s19 + $0xa8] sm:$0xff]  ;;  %v1343_v61 = vld [vmem:[%s1997_s19 + $0xb0] sm:$0xff] }
 0x2a1   : >> { %1340 = vst [vmem:[%s1993_s18 + $0xa0] sm:$0xff] %v1339_v35  ;;  %v1345_v51 = vld [vmem:[%s1997_s19 + $0xb8] sm:$0xff]  ;;  %1342 = vst [vmem:[%s1993_s18 + $0xa8] sm:$0xff] %v1341_v39  ;;  %v1347_v8 = vld [vmem:[%s1997_s19 + $0xc0] sm:$0xff] }
 0x2a2   : >> { %1344 = vst [vmem:[%s1993_s18 + $0xb0] sm:$0xff] %v1343_v61  ;;  %1346 = vst [vmem:[%s1993_s18 + $0xb8] sm:$0xff] %v1345_v51  ;;  %v1349_v9 = vld [vmem:[%s1997_s19 + $0xc8] sm:$0xff]  ;;  %v1351_v40 = vld [vmem:[%s1997_s19 + $0xd0] sm:$0xff] }
 0x2a3   : >> { %1348 = vst [vmem:[%s1993_s18 + $0xc0] sm:$0xff] %v1347_v8  ;;  %1350 = vst [vmem:[%s1993_s18 + $0xc8] sm:$0xff] %v1349_v9  ;;  %v1353_v43 = vld [vmem:[%s1997_s19 + $0xd8] sm:$0xff]  ;;  %v1355_v62 = vld [vmem:[%s1997_s19 + $0xe0] sm:$0xff] }
 0x2a4   : >> { %1352 = vst [vmem:[%s1993_s18 + $0xd0] sm:$0xff] %v1351_v40  ;;  %v1357_v16 = vld [vmem:[%s1997_s19 + $0xe8] sm:$0xff]  ;;  %1354 = vst [vmem:[%s1993_s18 + $0xd8] sm:$0xff] %v1353_v43  ;;  %v1359_v58 = vld [vmem:[%s1997_s19 + $0xf0] sm:$0xff] }
 0x2a5   : >> { %1356 = vst [vmem:[%s1993_s18 + $0xe0] sm:$0xff] %v1355_v62  ;;  %1358 = vst [vmem:[%s1993_s18 + $0xe8] sm:$0xff] %v1357_v16  ;;  %v1361_v45 = vld [vmem:[%s1997_s19 + $0xf8] sm:$0xff]  ;;  %v1363_v27 = vld [vmem:[%s1997_s19 + $0x100] sm:$0xff] }
 0x2a6   : >> { %1360 = vst [vmem:[%s1993_s18 + $0xf0] sm:$0xff] %v1359_v58  ;;  %1362 = vst [vmem:[%s1993_s18 + $0xf8] sm:$0xff] %v1361_v45  ;;  %v1365_v28 = vld [vmem:[%s1997_s19 + $0x108] sm:$0xff]  ;;  %v1367_v19 = vld [vmem:[%s1997_s19 + $0x110] sm:$0xff] }
 0x2a7   : >> { %1364 = vst [vmem:[%s1993_s18 + $0x100] sm:$0xff] %v1363_v27  ;;  %v1369_v33 = vld [vmem:[%s1997_s19 + $0x118] sm:$0xff]  ;;  %1366 = vst [vmem:[%s1993_s18 + $0x108] sm:$0xff] %v1365_v28  ;;  %v1371_v50 = vld [vmem:[%s1997_s19 + $0x120] sm:$0xff] }
 0x2a8   : >> { %1368 = vst [vmem:[%s1993_s18 + $0x110] sm:$0xff] %v1367_v19  ;;  %1370 = vst [vmem:[%s1993_s18 + $0x118] sm:$0xff] %v1369_v33  ;;  %v1373_v46 = vld [vmem:[%s1997_s19 + $0x128] sm:$0xff]  ;;  %v1375_v55 = vld [vmem:[%s1997_s19 + $0x130] sm:$0xff] }
 0x2a9   : >> { %1372 = vst [vmem:[%s1993_s18 + $0x120] sm:$0xff] %v1371_v50  ;;  %1374 = vst [vmem:[%s1993_s18 + $0x128] sm:$0xff] %v1373_v46  ;;  %v1377_v32 = vld [vmem:[%s1997_s19 + $0x138] sm:$0xff]  ;;  %v1379_v52 = vld [vmem:[%s1997_s19 + $0x140] sm:$0xff] }
 0x2aa   : >> { %1376 = vst [vmem:[%s1993_s18 + $0x130] sm:$0xff] %v1375_v55  ;;  %v1381_v60 = vld [vmem:[%s1997_s19 + $0x148] sm:$0xff]  ;;  %1378 = vst [vmem:[%s1993_s18 + $0x138] sm:$0xff] %v1377_v32  ;;  %v1383_v7 = vld [vmem:[%s1997_s19 + $0x150] sm:$0xff] }
 0x2ab   : >> { %1380 = vst [vmem:[%s1993_s18 + $0x140] sm:$0xff] %v1379_v52  ;;  %1382 = vst [vmem:[%s1993_s18 + $0x148] sm:$0xff] %v1381_v60  ;;  %v1385_v20 = vld [vmem:[%s1997_s19 + $0x158] sm:$0xff]  ;;  %v1387_v17 = vld [vmem:[%s1997_s19 + $0x160] sm:$0xff] }
 0x2ac   : >> { %1384 = vst [vmem:[%s1993_s18 + $0x150] sm:$0xff] %v1383_v7  ;;  %1386 = vst [vmem:[%s1993_s18 + $0x158] sm:$0xff] %v1385_v20  ;;  %v1389_v10 = vld [vmem:[%s1997_s19 + $0x168] sm:$0xff]  ;;  %v1391_v0 = vld [vmem:[%s1997_s19 + $0x170] sm:$0xff] }
 0x2ad   : >> { %1388 = vst [vmem:[%s1993_s18 + $0x160] sm:$0xff] %v1387_v17  ;;  %v1393_v24 = vld [vmem:[%s1997_s19 + $0x178] sm:$0xff]  ;;  %1390 = vst [vmem:[%s1993_s18 + $0x168] sm:$0xff] %v1389_v10  ;;  %v1395_v30 = vld [vmem:[%s1997_s19 + $0x180] sm:$0xff] }
 0x2ae   : >> { %1392 = vst [vmem:[%s1993_s18 + $0x170] sm:$0xff] %v1391_v0  ;;  %1394 = vst [vmem:[%s1993_s18 + $0x178] sm:$0xff] %v1393_v24  ;;  %v1397_v44 = vld [vmem:[%s1997_s19 + $0x188] sm:$0xff]  ;;  %v1399_v5 = vld [vmem:[%s1997_s19 + $0x190] sm:$0xff] }
 0x2af   : >> { %1396 = vst [vmem:[%s1993_s18 + $0x180] sm:$0xff] %v1395_v30  ;;  %1398 = vst [vmem:[%s1993_s18 + $0x188] sm:$0xff] %v1397_v44  ;;  %v1401_v47 = vld [vmem:[%s1997_s19 + $0x198] sm:$0xff]  ;;  %v1403_v14 = vld [vmem:[%s1997_s19 + $0x1a0] sm:$0xff] }
 0x2b0   : >> { %1400 = vst [vmem:[%s1993_s18 + $0x190] sm:$0xff] %v1399_v5  ;;  %v1405_v3 = vld [vmem:[%s1997_s19 + $0x1a8] sm:$0xff]  ;;  %1402 = vst [vmem:[%s1993_s18 + $0x198] sm:$0xff] %v1401_v47  ;;  %v1407_v31 = vld [vmem:[%s1997_s19 + $0x1b0] sm:$0xff] }
 0x2b1   : >> { %1404 = vst [vmem:[%s1993_s18 + $0x1a0] sm:$0xff] %v1403_v14  ;;  %1406 = vst [vmem:[%s1993_s18 + $0x1a8] sm:$0xff] %v1405_v3  ;;  %v1409_v53 = vld [vmem:[%s1997_s19 + $0x1b8] sm:$0xff]  ;;  %v1411_v4 = vld [vmem:[%s1997_s19 + $0x1c0] sm:$0xff] }
 0x2b2   : >> { %1408 = vst [vmem:[%s1993_s18 + $0x1b0] sm:$0xff] %v1407_v31  ;;  %1410 = vst [vmem:[%s1993_s18 + $0x1b8] sm:$0xff] %v1409_v53  ;;  %v1413_v18 = vld [vmem:[%s1997_s19 + $0x1c8] sm:$0xff]  ;;  %v1415_v38 = vld [vmem:[%s1997_s19 + $0x1d0] sm:$0xff]  ;;  %1295 = sbr.rel (!%p1292_p7) target bundleno = 662 (0x296), region = 164 }
 0x2b3   : >> { %1412 = vst [vmem:[%s1993_s18 + $0x1c0] sm:$0xff] %v1411_v4  ;;  %v1417_v2 = vld [vmem:[%s1997_s19 + $0x1d8] sm:$0xff]  ;;  %1414 = vst [vmem:[%s1993_s18 + $0x1c8] sm:$0xff] %v1413_v18  ;;  %v1419_v48 = vld [vmem:[%s1997_s19 + $0x1e0] sm:$0xff] }
 0x2b4   : >> { %1416 = vst [vmem:[%s1993_s18 + $0x1d0] sm:$0xff] %v1415_v38  ;;  %1418 = vst [vmem:[%s1993_s18 + $0x1d8] sm:$0xff] %v1417_v2  ;;  %v1421_v13 = vld [vmem:[%s1997_s19 + $0x1e8] sm:$0xff]  ;;  %v1423_v12 = vld [vmem:[%s1997_s19 + $0x1f0] sm:$0xff] }
 0x2b5   : >> { %1420 = vst [vmem:[%s1993_s18 + $0x1e0] sm:$0xff] %v1419_v48  ;;  %1422 = vst [vmem:[%s1993_s18 + $0x1e8] sm:$0xff] %v1421_v13  ;;  %v1425_v57 = vld [vmem:[%s1997_s19 + $0x1f8] sm:$0xff]  ;;  %s3198_s19 = smov %s3016_s24 }
 0x2b6   : >> { %1424 = vst [vmem:[%s1993_s18 + $0x1f0] sm:$0xff] %v1423_v12  ;;  %1426 = vst [vmem:[%s1993_s18 + $0x1f8] sm:$0xff] %v1425_v57  ;;  %s3197_s18 = smov %s3019_s25 }
 0x2b7 PF: > { %s3125_s26 = sand.u32 63, %s1286_s12   ;;  %s1648_s27 = sshll.u32 %s2949_s17, 13 }
 0x2b8   : > { %s1438_s28 = sshra.s32 %s1648_s27, 4  ;;  %p1638_p8 = scmp.le.s32.totalorder %s3125_s26, 0 }
 0x2b9   : > { %s1439_s29 = scalar_lea.vmem %s2729_s30, %s1438_s28 [#allocation2]   ;;  %s1442_s3 = scalar_lea.vmem %s2738_s7, %s1438_s28  }
 0x2ba   : > { %1579 = sbr.rel (%p1638_p8) target bundleno = 711 (0x2c7), region = 169  ;;  %s2007_s5 = smov (!%p1638_p8), %s1442_s3  }
 0x2bb   : > { %s2011_s6 = smov (!%p1638_p8), %s1439_s29   ;;  %s2015_s8 = smov (!%p1638_p8), 0  }
 0x2bc   : > { %s2019_s21 = smov (!%p1638_p8), 0  }
 0x2bf LB: >> { %v1454_v1 = vld [vmem:[%s2013_s6] sm:$0xff]  ;;  %s1456_s12 = sadd.s32 1, %s2017_s8  ;;  %s1448_s21 = sadd.s32 1, %s2021_s21   ;;  %s2021_s21 = sphi %s2019_s21, %s1448_s21   ;;  %s2017_s8 = sphi %s2015_s8, %s2016_s8   ;;  %s2013_s6 = sphi %s2011_s6, %s1461_s6   ;;  %s2009_s5 = sphi %s2007_s5, %s1462_s5  }
 0x2c0   : >> { %1455 = vst [vmem:[%s2009_s5] sm:$0xff] %v1454_v1  ;;  %p1457_p9 = scmp.ge.s32.totalorder %s1456_s12, %s3125_s26  ;;  %p1447_p10 = scmp.ge.s32.totalorder %s1448_s21, %s3125_s26 }
 0x2c2   : >> { %s3214_s12 = smov (%p1457_p9, %s1456_s12), 0  ;;  %1450 = sbr.rel (!%p1447_p10) target bundleno = 703 (0x2bf), region = 175 }
 0x2c3   : >> { %s1639_s17 = sshll.u32 %s3214_s12, 3  ;;  %s2016_s8 = smov %s3214_s12  }
 0x2c4   : >> { %s1461_s6 = scalar_lea.vmem %s1439_s29, %s1639_s17 [#allocation2]   ;;  %s1462_s5 = scalar_lea.vmem %s1442_s3, %s1639_s17  }
 0x2c7 PF: > { %s2025_s18 = smov 1  }
 0x2c8   : > { %s1463_s19 = sshll.u32 %s2025_s18, %s2745_s9 }
 0x2c9   : > { %s1641_s20 = sadd.s32 4294967295, %s1463_s19 }
 0x2ca   : > { %v1473_v29 = vld [vmem:[%s1283_s14] sm:%s1641_s20] }
 0x2cb   : > { %1474 = vst [vmem:[%s1285_s15] sm:%s1641_s20] %v1473_v29 }
 0x2cc PF: > { %p1642_p11 = scmp.ge.u32.totalorder %s3206_s4, 8 }
 0x2cd   : > { %s2026_s22 = smov (!%p1642_p11), 1  }
 0x2ce   : > { %1083 = sbr.rel (%p1642_p11) target bundleno = 725 (0x2d5), region = 44  ;;  %s1084_s23 = sshll.u32 (!%p1642_p11), %s2026_s22, %s3206_s4 }
 0x2cf   : > { %s1643_s24 = sadd.s32 (!%p1642_p11), 4294967295, %s1084_s23 }
 0x2d3   : > { %v1094_v25 = vld [vmem:[%s2729_s30] sm:%s1643_s24] }
 0x2d4   : > { %1095 = vst [vmem:[%s2738_s7] sm:%s1643_s24] %v1094_v25 }
 0x2d5 PF: > { %p9_p12 = scmp.ge.s32.totalorder %s2057_s13, 4   ;;  %s3200_s9 = smov %s1953_s10 }
 0x2d6   : > { %s3201_s10 = smov %s2065_s16  ;;  %s3202_s11 = smov %s2057_s13 }
 0x2d7   :  { %11 = sbr.rel (!%p9_p12) target bundleno = 2 (0x2), region = 186 }

</bundles_post_ra>
